<compile_context>
chip_gen: v6e
topology: v6e:2x2x1
jax: 0.10.0
libtpu: 0.0.40
codegen_flags: <defaults>
</compile_context>

<pallas_src>
import functools
import math

import jax
import jax.numpy as jnp
from jax.experimental import pallas as pl
from jax.experimental.pallas import tpu as pltpu


def _round_up(x, m):
    return (x + m - 1) // m * m


def _cdiv(a, b):
    return (a + b - 1) // b


def _vae_tile_kernel(x_ref, eps_ref,
                     w1_ref, b1_ref, wh_ref, bh_ref,
                     wd1_ref, bd1_ref, wd2_ref, bd2_ref,
                     loss_ref, *, z_dim, bf16_eup):
    """One [TM, D] batch tile -> per-row partial [BCE, KLD] sums written as [TM, 2]."""
    x_bf = x_ref[...]                                # [TM, D] bf16 targets in {0,1} (exact)

    # ---------------- MLP encoder: Linear -> ReLU -> fused (mean | log_std) head ----------------
    h = jnp.dot(x_bf, w1_ref[...], preferred_element_type=jnp.float32) + b1_ref[...]
    h = jnp.maximum(h, 0.0)                          # ReLU (f32 VPU)
    ms = jnp.dot(h.astype(jnp.bfloat16), wh_ref[...],
                 preferred_element_type=jnp.float32) + bh_ref[...]
    mean = ms[:, :z_dim]
    log_std = ms[:, z_dim:]

    # ---------------- reparameterization (f32, EUP exp) ----------------
    z = mean + jnp.exp(log_std) * eps_ref[...]

    # ---------------- MLP decoder: Linear -> ReLU -> Linear ----------------
    hd = jnp.dot(z.astype(jnp.bfloat16), wd1_ref[...],
                 preferred_element_type=jnp.float32) + bd1_ref[...]
    hd = jnp.maximum(hd, 0.0)
    logits = jnp.dot(hd.astype(jnp.bfloat16), wd2_ref[...],
                     preferred_element_type=jnp.float32) + bd2_ref[...]

    # ---------------- BCEWithLogits (numerically stable), lane-reduced to [TM, 1] ----------------
    x = x_bf.astype(jnp.float32)
    neg_abs = -jnp.abs(logits)
    if bf16_eup:
        # v6e/v7x: bf16 EUP path (~2x exp/log throughput); accumulation stays f32.
        softplus = jnp.log1p(jnp.exp(neg_abs.astype(jnp.bfloat16))).astype(jnp.float32)
    else:
        # v5e has no bf16 EUP -> keep the transcendentals in f32.
        softplus = jnp.log1p(jnp.exp(neg_abs))
    bce = jnp.maximum(logits, 0.0) - logits * x + softplus
    loss_ref[:, 0:1] = jnp.sum(bce, axis=-1, keepdims=True)

    # ---------------- KLD(N(mean, exp(log_std)) || N(0,1)), per-row sums ----------------
    kld = 0.5 * (jnp.exp(2.0 * log_std) + mean * mean - 1.0 - 2.0 * log_std)
    loss_ref[:, 1:2] = jnp.sum(kld, axis=-1, keepdims=True)


def _choose_tile(B, tile_m):
    """Balanced batch tiling.

    * TM is a multiple of 16 (bf16 sublane packing for the x tile).
    * At least 2 tiles whenever B allows, so both v7x TensorCores get work under
      dimension_semantics=("parallel",).
    * Tiles are balanced (TM ~= ceil(B / n_tiles)) so awkward B doesn't pad up ~2x.
    """
    tile_m = max(16, _round_up(tile_m, 16))
    n = max(1, _cdiv(B, tile_m))          # tiles required at the cap
    if B >= 32:                           # enough rows to feed two TensorCores
        n = max(n, 2)
    TM = _round_up(_cdiv(B, n), 16)       # balanced tile height, sublane-aligned
    return TM, n


def vae_forward(imgs, eps, params, *, tile_m=512):
    """Returns (L_rec/B, L_reg/B, bpd/B) as scalars; core math runs in one Pallas kernel."""
    B, C, H, W = imgs.shape
    D = C * H * W
    z_dim = eps.shape[1]
    hidden = params["w1"].shape[1]

    # Row-major NCHW flatten (free under jit). Targets are exactly {0,1}, so streaming them
    # as bf16 is lossless and halves the dominant (mem-bound) x DMA.
    # TODO(synk): a uint8 x stream would quarter the DMA bytes; requires TM % 32 == 0.
    x = imgs.reshape(B, D).astype(jnp.bfloat16)
    eps = eps.astype(jnp.float32)

    TM, n_tiles = _choose_tile(B, tile_m)
    B_pad = TM * n_tiles
    if B_pad != B:
        x = jnp.pad(x, ((0, B_pad - B), (0, 0)))
        eps = jnp.pad(eps, ((0, B_pad - B), (0, 0)))
    grid = (n_tiles,)

    # bf16 MXU weights (fast path, half the weight DMA bytes); biases stay f32.
    w1 = params["w1"].astype(jnp.bfloat16)
    wh = jnp.concatenate([params["wm"], params["ws"]], axis=1).astype(jnp.bfloat16)
    bh = jnp.concatenate([params["bm"], params["bs"]], axis=1).astype(jnp.float32)
    wd1 = params["wd1"].astype(jnp.bfloat16)
    wd2 = params["wd2"].astype(jnp.bfloat16)
    b1 = params["b1"].astype(jnp.float32)
    bd1 = params["bd1"].astype(jnp.float32)
    bd2 = params["bd2"].astype(jnp.float32)

    # Generation-gated bf16 EUP path (v6e/v7x only); evaluated at trace time.
    try:
        kind = jax.devices()[0].device_kind.lower()
    except Exception:
        kind = ""
    bf16_eup = ("v6" in kind) or ("v7" in kind)

    def tiled(i):      # per-tile block along the batch axis
        return (i, 0)

    def pinned(i):     # grid-invariant block: DMA'd once, resident across all tiles
        return (0, 0)

    weight_elems = D * hidden + hidden * 2 * z_dim + z_dim * hidden + hidden * D
    cost = pl.CostEstimate(
        flops=2 * B_pad * weight_elems,
        transcendentals=B_pad * (2 * D + 3 * z_dim),
        bytes_accessed=(B_pad * D * 2                     # x (bf16)
                        + B_pad * z_dim * 4               # eps (f32)
                        + 2 * weight_elems                # bf16 weights
                        + 4 * (hidden + 2 * z_dim + hidden + D)   # f32 biases
                        + B_pad * 2 * 4))                 # per-row partial sums

    loss_rows = pl.pallas_call(
        functools.partial(_vae_tile_kernel, z_dim=z_dim, bf16_eup=bf16_eup),
        out_shape=jax.ShapeDtypeStruct((B_pad, 2), jnp.float32),
        grid=grid,
        in_specs=[
            pl.BlockSpec((TM, D), tiled),               # x  (bf16 targets)
            pl.BlockSpec((TM, z_dim), tiled),           # eps
            pl.BlockSpec((D, hidden), pinned),          # w1
            pl.BlockSpec((1, hidden), pinned),          # b1
            pl.BlockSpec((hidden, 2 * z_dim), pinned),  # wh  (fused mean|log_std head)
            pl.BlockSpec((1, 2 * z_dim), pinned),       # bh
            pl.BlockSpec((z_dim, hidden), pinned),      # wd1
            pl.BlockSpec((1, hidden), pinned),          # bd1
            pl.BlockSpec((hidden, D), pinned),          # wd2
            pl.BlockSpec((1, D), pinned),               # bd2
        ],
        out_specs=pl.BlockSpec((TM, 2), tiled),         # merged [rec | kld] per-row sums
        compiler_params=pltpu.CompilerParams(
            # Each tile writes its own output block -> batch axis is truly parallel
            # (both v7x TensorCores take a share of the tiles).
            dimension_semantics=("parallel",)),
        cost_estimate=cost,
    )(x, eps, w1, b1, wh, bh, wd1, bd1, wd2, bd2)

    # Tiny scalar finalization in the wrapper (outside the per-tile hot path).
    # Slicing to :B also discards the zero-padded rows, so no in-kernel mask is needed.
    L_rec = jnp.sum(loss_rows[:B, 0])
    L_reg = jnp.sum(loss_rows[:B, 1])
    log2e = 1.4426950408889634
    bpd = (L_rec + L_reg) * log2e / D
    inv_b = 1.0 / B
    return L_rec * inv_b, L_reg * inv_b, bpd * inv_b


def vae_forward_ref(imgs, eps, params):
    """Pure-JAX f32 reference with identical semantics (for correctness check)."""
    B = imgs.shape[0]
    pix = imgs.shape[1] * imgs.shape[2] * imgs.shape[3]
    x = imgs.reshape(B, -1).astype(jnp.float32)
    h = jax.nn.relu(x @ params["w1"] + params["b1"])
    mean = h @ params["wm"] + params["bm"]
    log_std = h @ params["ws"] + params["bs"]
    z = mean + jnp.exp(log_std) * eps
    hd = jax.nn.relu(z @ params["wd1"] + params["bd1"])
    logits = hd @ params["wd2"] + params["bd2"]
    bce = jnp.maximum(logits, 0.0) - logits * x + jnp.log1p(jnp.exp(-jnp.abs(logits)))
    L_rec = jnp.sum(bce)
    L_reg = jnp.sum(0.5 * (jnp.exp(2.0 * log_std) + mean ** 2 - 1.0 - 2.0 * log_std))
    bpd = (L_rec + L_reg) * (1.0 / math.log(2.0)) / pix
    return L_rec / B, L_reg / B, bpd / B


if __name__ == "__main__":
    # Small shapes consistent with the module's forward: imgs [B, C, H, W].
    B, C, H, W = 2, 4, 16, 16
    D = C * H * W          # 1024 flattened pixels per image
    hidden = 128           # hidden_dims = [128]
    z_dim = 32             # latent dimension

    key = jax.random.PRNGKey(0)
    keys = jax.random.split(key, 12)

    def init(k, shape, scale):
        return jax.random.normal(k, shape, dtype=jnp.float32) * scale

    params = {
        # encoder
        "w1": init(keys[0], (D, hidden), 1.0 / math.sqrt(D)),
        "b1": init(keys[1], (1, hidden), 0.01),
        "wm": init(keys[2], (hidden, z_dim), 1.0 / math.sqrt(hidden)),
        "bm": init(keys[3], (1, z_dim), 0.01),
        "ws": init(keys[4], (hidden, z_dim), 1.0 / math.sqrt(hidden)),
        "bs": init(keys[5], (1, z_dim), 0.01),
        # decoder (hidden_dims reversed)
        "wd1": init(keys[6], (z_dim, hidden), 1.0 / math.sqrt(z_dim)),
        "bd1": init(keys[7], (1, hidden), 0.01),
        "wd2": init(keys[8], (hidden, D), 1.0 / math.sqrt(hidden)),
        "bd2": init(keys[9], (1, D), 0.01),
    }

    # Binarized images in {0,1} (valid BCE targets), and the reparameterization noise.
    imgs = (jax.random.uniform(keys[10], (B, C, H, W)) > 0.5).astype(jnp.float32)
    # TODO(synk): eps ~ N(0,1) is drawn with jax.random in the wrapper (glue) rather than
    # with the in-kernel hardware PRNG, to keep it deterministic & comparable to torch.randn.
    eps = jax.random.normal(keys[11], (B, z_dim), dtype=jnp.float32)

    fwd = jax.jit(vae_forward)
    out = jax.block_until_ready(fwd(imgs, eps, params))
    ref = vae_forward_ref(imgs, eps, params)

    # bf16 MXU operands (and bf16 EUP softplus on v6e/v7x) vs. f32 reference -> modest tolerance.
    for got, want in zip(out, ref):
        assert jnp.allclose(got, want, rtol=2e-2, atol=2e-2), (got, want)

    print("KERNEL_OK")
</pallas_src>

<mosaic_0001>
module attributes {stable_mosaic.version = 11 : i64} {
  func.func @_vae_tile_kernel(%arg0: i32, %arg1: memref<16x1024xbf16, #tpu.memory_space<vmem>>, %arg2: memref<16x32xf32, #tpu.memory_space<vmem>>, %arg3: memref<1024x128xbf16, #tpu.memory_space<vmem>>, %arg4: memref<1x128xf32, #tpu.memory_space<vmem>>, %arg5: memref<128x64xbf16, #tpu.memory_space<vmem>>, %arg6: memref<1x64xf32, #tpu.memory_space<vmem>>, %arg7: memref<32x128xbf16, #tpu.memory_space<vmem>>, %arg8: memref<1x128xf32, #tpu.memory_space<vmem>>, %arg9: memref<128x1024xbf16, #tpu.memory_space<vmem>>, %arg10: memref<1x1024xf32, #tpu.memory_space<vmem>>, %arg11: memref<16x2xf32, #tpu.memory_space<vmem>>) attributes {dimension_semantics = [#tpu.dimension_semantics<parallel>], iteration_bounds = array<i64: 1>, scalar_prefetch = 0 : i64, scratch_operands = 0 : i64, tpu.core_type = #tpu.core_type<tc>, window_params = [{transform_indices = @transform_0, window_bounds = array<i64: 16, 1024>}, {transform_indices = @transform_1, window_bounds = array<i64: 16, 32>}, {pipeline_mode = #tpu.pipeline_mode<synchronous>, transform_indices = @transform_2, window_bounds = array<i64: 1024, 128>}, {pipeline_mode = #tpu.pipeline_mode<synchronous>, transform_indices = @transform_3, window_bounds = array<i64: 1, 128>}, {pipeline_mode = #tpu.pipeline_mode<synchronous>, transform_indices = @transform_4, window_bounds = array<i64: 128, 64>}, {pipeline_mode = #tpu.pipeline_mode<synchronous>, transform_indices = @transform_5, window_bounds = array<i64: 1, 64>}, {pipeline_mode = #tpu.pipeline_mode<synchronous>, transform_indices = @transform_6, window_bounds = array<i64: 32, 128>}, {pipeline_mode = #tpu.pipeline_mode<synchronous>, transform_indices = @transform_7, window_bounds = array<i64: 1, 128>}, {pipeline_mode = #tpu.pipeline_mode<synchronous>, transform_indices = @transform_8, window_bounds = array<i64: 128, 1024>}, {pipeline_mode = #tpu.pipeline_mode<synchronous>, transform_indices = @transform_9, window_bounds = array<i64: 1, 1024>}, {transform_indices = @transform_10, window_bounds = array<i64: 16, 2>}]} {
    %c0 = arith.constant 0 : index
    %c0_0 = arith.constant 0 : index
    %0 = vector.load %arg1[%c0, %c0_0] : memref<16x1024xbf16, #tpu.memory_space<vmem>>, vector<16x1024xbf16>
    %c0_1 = arith.constant 0 : index
    %c0_2 = arith.constant 0 : index
    %1 = vector.load %arg3[%c0_1, %c0_2] : memref<1024x128xbf16, #tpu.memory_space<vmem>>, vector<1024x128xbf16>
    %cst = arith.constant dense<0.000000e+00> : vector<16x128xf32>
    %2 = tpu.matmul %0, %1, %cst {dimension_numbers = #tpu.dot_dimension_numbers<[1], [0], [0], [1], [0, 0, 1, 1], [], []>} : vector<16x1024xbf16>, vector<1024x128xbf16>, vector<16x128xf32> -> vector<16x128xf32>
    %c0_3 = arith.constant 0 : index
    %c0_4 = arith.constant 0 : index
    %3 = vector.load %arg4[%c0_3, %c0_4] : memref<1x128xf32, #tpu.memory_space<vmem>>, vector<1x128xf32>
    %4 = vector.broadcast %3 : vector<1x128xf32> to vector<16x128xf32>
    %5 = arith.addf %2, %4 : vector<16x128xf32>
    %cst_5 = arith.constant 0.000000e+00 : f32
    %6 = vector.broadcast %cst_5 : f32 to vector<16x128xf32>
    %7 = arith.maximumf %5, %6 : vector<16x128xf32>
    %8 = arith.truncf %7 : vector<16x128xf32> to vector<16x128xbf16>
    %c0_6 = arith.constant 0 : index
    %c0_7 = arith.constant 0 : index
    %9 = vector.load %arg5[%c0_6, %c0_7] : memref<128x64xbf16, #tpu.memory_space<vmem>>, vector<128x64xbf16>
    %cst_8 = arith.constant dense<0.000000e+00> : vector<16x64xf32>
    %10 = tpu.matmul %8, %9, %cst_8 {dimension_numbers = #tpu.dot_dimension_numbers<[1], [0], [0], [1], [0, 0, 1, 1], [], []>} : vector<16x128xbf16>, vector<128x64xbf16>, vector<16x64xf32> -> vector<16x64xf32>
    %c0_9 = arith.constant 0 : index
    %c0_10 = arith.constant 0 : index
    %11 = vector.load %arg6[%c0_9, %c0_10] : memref<1x64xf32, #tpu.memory_space<vmem>>, vector<1x64xf32>
    %12 = vector.broadcast %11 : vector<1x64xf32> to vector<16x64xf32>
    %13 = arith.addf %10, %12 : vector<16x64xf32>
    %14 = vector.extract_strided_slice %13 {offsets = [0, 0], sizes = [16, 32], strides = [1, 1]} : vector<16x64xf32> to vector<16x32xf32>
    %15 = vector.extract_strided_slice %13 {offsets = [0, 32], sizes = [16, 32], strides = [1, 1]} : vector<16x64xf32> to vector<16x32xf32>
    %16 = math.exp %15 : vector<16x32xf32>
    %c0_11 = arith.constant 0 : index
    %c0_12 = arith.constant 0 : index
    %17 = vector.load %arg2[%c0_11, %c0_12] : memref<16x32xf32, #tpu.memory_space<vmem>>, vector<16x32xf32>
    %18 = arith.mulf %16, %17 : vector<16x32xf32>
    %19 = arith.addf %14, %18 : vector<16x32xf32>
    %20 = arith.truncf %19 : vector<16x32xf32> to vector<16x32xbf16>
    %c0_13 = arith.constant 0 : index
    %c0_14 = arith.constant 0 : index
    %21 = vector.load %arg7[%c0_13, %c0_14] : memref<32x128xbf16, #tpu.memory_space<vmem>>, vector<32x128xbf16>
    %cst_15 = arith.constant dense<0.000000e+00> : vector<16x128xf32>
    %22 = tpu.matmul %20, %21, %cst_15 {dimension_numbers = #tpu.dot_dimension_numbers<[1], [0], [0], [1], [0, 0, 1, 1], [], []>} : vector<16x32xbf16>, vector<32x128xbf16>, vector<16x128xf32> -> vector<16x128xf32>
    %c0_16 = arith.constant 0 : index
    %c0_17 = arith.constant 0 : index
    %23 = vector.load %arg8[%c0_16, %c0_17] : memref<1x128xf32, #tpu.memory_space<vmem>>, vector<1x128xf32>
    %24 = vector.broadcast %23 : vector<1x128xf32> to vector<16x128xf32>
    %25 = arith.addf %22, %24 : vector<16x128xf32>
    %cst_18 = arith.constant 0.000000e+00 : f32
    %26 = vector.broadcast %cst_18 : f32 to vector<16x128xf32>
    %27 = arith.maximumf %25, %26 : vector<16x128xf32>
    %28 = arith.truncf %27 : vector<16x128xf32> to vector<16x128xbf16>
    %c0_19 = arith.constant 0 : index
    %c0_20 = arith.constant 0 : index
    %29 = vector.load %arg9[%c0_19, %c0_20] : memref<128x1024xbf16, #tpu.memory_space<vmem>>, vector<128x1024xbf16>
    %cst_21 = arith.constant dense<0.000000e+00> : vector<16x1024xf32>
    %30 = tpu.matmul %28, %29, %cst_21 {dimension_numbers = #tpu.dot_dimension_numbers<[1], [0], [0], [1], [0, 0, 1, 1], [], []>} : vector<16x128xbf16>, vector<128x1024xbf16>, vector<16x1024xf32> -> vector<16x1024xf32>
    %c0_22 = arith.constant 0 : index
    %c0_23 = arith.constant 0 : index
    %31 = vector.load %arg10[%c0_22, %c0_23] : memref<1x1024xf32, #tpu.memory_space<vmem>>, vector<1x1024xf32>
    %32 = vector.broadcast %31 : vector<1x1024xf32> to vector<16x1024xf32>
    %33 = arith.addf %30, %32 : vector<16x1024xf32>
    %34 = arith.extf %0 : vector<16x1024xbf16> to vector<16x1024xf32>
    %35 = math.absf %33 : vector<16x1024xf32>
    %cst_24 = arith.constant 0.000000e+00 : f32
    %36 = vector.broadcast %cst_24 : f32 to vector<16x1024xf32>
    %37 = arith.subf %36, %35 : vector<16x1024xf32>
    %38 = math.exp %37 : vector<16x1024xf32>
    %39 = math.log1p %38 : vector<16x1024xf32>
    %cst_25 = arith.constant 0.000000e+00 : f32
    %40 = vector.broadcast %cst_25 : f32 to vector<16x1024xf32>
    %41 = arith.maximumf %33, %40 : vector<16x1024xf32>
    %42 = arith.mulf %33, %34 : vector<16x1024xf32>
    %43 = arith.subf %41, %42 : vector<16x1024xf32>
    %44 = arith.addf %43, %39 : vector<16x1024xf32>
    %cst_26 = arith.constant dense<0.000000e+00> : vector<16xf32>
    %45 = vector.multi_reduction <add>, %44, %cst_26 [1] : vector<16x1024xf32> to vector<16xf32>
    %46 = vector.shape_cast %45 : vector<16xf32> to vector<16x1xf32>
    %c0_27 = arith.constant 0 : index
    %c0_28 = arith.constant 0 : index
    %47 = vector.load %arg11[%c0_27, %c0_28] : memref<16x2xf32, #tpu.memory_space<vmem>>, vector<16x1xf32>
    tpu.vector_store %arg11[%c0_27, %c0_28], %46 {strides = array<i32>} : memref<16x2xf32, #tpu.memory_space<vmem>>, vector<16x1xf32>,
    %cst_29 = arith.constant 2.000000e+00 : f32
    %48 = vector.broadcast %cst_29 : f32 to vector<16x32xf32>
    %49 = arith.mulf %48, %15 : vector<16x32xf32>
    %50 = math.exp %49 : vector<16x32xf32>
    %51 = arith.mulf %14, %14 : vector<16x32xf32>
    %52 = arith.addf %50, %51 : vector<16x32xf32>
    %cst_30 = arith.constant 1.000000e+00 : f32
    %53 = vector.broadcast %cst_30 : f32 to vector<16x32xf32>
    %54 = arith.subf %52, %53 : vector<16x32xf32>
    %cst_31 = arith.constant 2.000000e+00 : f32
    %55 = vector.broadcast %cst_31 : f32 to vector<16x32xf32>
    %56 = arith.mulf %55, %15 : vector<16x32xf32>
    %57 = arith.subf %54, %56 : vector<16x32xf32>
    %cst_32 = arith.constant 5.000000e-01 : f32
    %58 = vector.broadcast %cst_32 : f32 to vector<16x32xf32>
    %59 = arith.mulf %58, %57 : vector<16x32xf32>
    %cst_33 = arith.constant dense<0.000000e+00> : vector<16xf32>
    %60 = vector.multi_reduction <add>, %59, %cst_33 [1] : vector<16x32xf32> to vector<16xf32>
    %61 = vector.shape_cast %60 : vector<16xf32> to vector<16x1xf32>
    %c0_34 = arith.constant 0 : index
    %c1 = arith.constant 1 : index
    %62 = vector.load %arg11[%c0_34, %c1] : memref<16x2xf32, #tpu.memory_space<vmem>>, vector<16x1xf32>
    tpu.vector_store %arg11[%c0_34, %c1], %61 {strides = array<i32>} : memref<16x2xf32, #tpu.memory_space<vmem>>, vector<16x1xf32>,
    return
  }
  func.func @transform_0(%arg0: i32) -> (i32, i32) {
    %c0_i32 = arith.constant 0 : i32
    %c0_i32_0 = arith.constant 0 : i32
    return %arg0, %c0_i32 : i32, i32
  }
  func.func @transform_1(%arg0: i32) -> (i32, i32) {
    %c0_i32 = arith.constant 0 : i32
    %c0_i32_0 = arith.constant 0 : i32
    return %arg0, %c0_i32 : i32, i32
  }
  func.func @transform_2(%arg0: i32) -> (i32, i32) {
    %c0_i32 = arith.constant 0 : i32
    %c0_i32_0 = arith.constant 0 : i32
    %c0_i32_1 = arith.constant 0 : i32
    return %c0_i32, %c0_i32_0 : i32, i32
  }
  func.func @transform_3(%arg0: i32) -> (i32, i32) {
    %c0_i32 = arith.constant 0 : i32
    %c0_i32_0 = arith.constant 0 : i32
    %c0_i32_1 = arith.constant 0 : i32
    return %c0_i32, %c0_i32_0 : i32, i32
  }
  func.func @transform_4(%arg0: i32) -> (i32, i32) {
    %c0_i32 = arith.constant 0 : i32
    %c0_i32_0 = arith.constant 0 : i32
    %c0_i32_1 = arith.constant 0 : i32
    return %c0_i32, %c0_i32_0 : i32, i32
  }
  func.func @transform_5(%arg0: i32) -> (i32, i32) {
    %c0_i32 = arith.constant 0 : i32
    %c0_i32_0 = arith.constant 0 : i32
    %c0_i32_1 = arith.constant 0 : i32
    return %c0_i32, %c0_i32_0 : i32, i32
  }
  func.func @transform_6(%arg0: i32) -> (i32, i32) {
    %c0_i32 = arith.constant 0 : i32
    %c0_i32_0 = arith.constant 0 : i32
    %c0_i32_1 = arith.constant 0 : i32
    return %c0_i32, %c0_i32_0 : i32, i32
  }
  func.func @transform_7(%arg0: i32) -> (i32, i32) {
    %c0_i32 = arith.constant 0 : i32
    %c0_i32_0 = arith.constant 0 : i32
    %c0_i32_1 = arith.constant 0 : i32
    return %c0_i32, %c0_i32_0 : i32, i32
  }
  func.func @transform_8(%arg0: i32) -> (i32, i32) {
    %c0_i32 = arith.constant 0 : i32
    %c0_i32_0 = arith.constant 0 : i32
    %c0_i32_1 = arith.constant 0 : i32
    return %c0_i32, %c0_i32_0 : i32, i32
  }
  func.func @transform_9(%arg0: i32) -> (i32, i32) {
    %c0_i32 = arith.constant 0 : i32
    %c0_i32_0 = arith.constant 0 : i32
    %c0_i32_1 = arith.constant 0 : i32
    return %c0_i32, %c0_i32_0 : i32, i32
  }
  func.func @transform_10(%arg0: i32) -> (i32, i32) {
    %c0_i32 = arith.constant 0 : i32
    %c0_i32_0 = arith.constant 0 : i32
    return %arg0, %c0_i32 : i32, i32
  }
}

</mosaic_0001>

<bundles_post_ra>
// kernel: vae_forward.1
= control target key start
LH: loop header
LB: loop body
LE: loop exit
PB: predicated region body
PF: predicated region fallthrough
CT: control target
= control target key end

     0   :  { %vm2369_vm0 = vmmov 0   ;;  %s2370_s14 = smov 32   ;;  %s2371_s20 = smov 96   ;;  %vm932_vm1 = vcmask 261120   ;;  %s3298_s2 = inlined_call_operand.vmem [shape: bf16[1024,128], index: 2, kind: input, shape index: {}]   ;;  %s3299_s0 = inlined_call_operand.vmem [shape: bf16[16,1024], index: 0, kind: input, shape index: {}]   ;;  %s3300_s4 = inlined_call_operand.vmem [shape: bf16[128,64], index: 4, kind: input, shape index: {}]   ;;  %s3301_s1 = inlined_call_operand.vmem [shape: f32[16,32], index: 1, kind: input, shape index: {}]   ;;  %s3302_s3 = inlined_call_operand.vmem [shape: f32[1,128], index: 3, kind: input, shape index: {}]   ;;  %s3303_s5 = inlined_call_operand.vmem [shape: f32[1,64], index: 5, kind: input, shape index: {}]   ;;  %s3304_s6 = inlined_call_operand.vmem [shape: bf16[32,128], index: 6, kind: input, shape index: {}]   ;;  %s3305_s8 = inlined_call_operand.vmem [shape: bf16[128,1024], index: 8, kind: input, shape index: {}]   ;;  %s3306_s7 = inlined_call_operand.vmem [shape: f32[1,128], index: 7, kind: input, shape index: {}]   ;;  %s3307_s9 = inlined_call_operand.vmem [shape: f32[1,1024], index: 9, kind: input, shape index: {}]   ;;  %s3308_s10 = inlined_call_operand.vmem [shape: f32[16,2], index: 10, kind: output, shape index: {}]  }
   0x1   :  { %v2217_v0 = vld [vmem:[%s3298_s2 + $0x78] sm:$0xff]   ;;  %v2221_v4 = vld [vmem:[%s3298_s2 + $0x70] sm:$0xff]   ;;  %v2225_v8 = vld [vmem:[%s3298_s2 + $0x68] sm:$0xff]  }
   0x2   :  { %v2218_v1 = vld [vmem:[%s3298_s2 + $0xf8] sm:$0xff]   ;;  %2084 = vmatprep.subr.bf16.mxu0 %v2217_v0  ;;  %v2222_v5 = vld [vmem:[%s3298_s2 + $0xf0] sm:$0xff]   ;;  %v2226_v9 = vld [vmem:[%s3298_s2 + $0xe8] sm:$0xff]  }
   0x3   :  { %v2219_v2 = vld [vmem:[%s3298_s2 + $0x38] sm:$0xff]   ;;  %2106 = vmatprep.subr.bf16.mxu1 %v2218_v1  ;;  %v2223_v6 = vld [vmem:[%s3298_s2 + $0x30] sm:$0xff]   ;;  %v2227_v10 = vld [vmem:[%s3298_s2 + $0x28] sm:$0xff]  }
   0x4   :  { %v2220_v3 = vld [vmem:[%s3298_s2 + $0xb8] sm:$0xff]   ;;  %2085 = vmatpush3.bf16.msra.mxu0 %v2219_v2  ;;  %v2224_v7 = vld [vmem:[%s3298_s2 + $0xb0] sm:$0xff]   ;;  %v2228_v11 = vld [vmem:[%s3298_s2 + $0xa8] sm:$0xff]  }
   0x5   :  { %2107 = vmatpush3.bf16.msra.mxu1 %v2220_v3  ;;  %2086 = vmatprep.subr.bf16.mxu0 %v2221_v4  ;;  %v2229_v12 = vld [vmem:[%s3298_s2 + $0x60] sm:$0xff]   ;;  %v2233_v16 = vld [vmem:[%s3298_s2 + $0x58] sm:$0xff]   ;;  %v2237_v20 = vld [vmem:[%s3298_s2 + $0x50] sm:$0xff]  }
   0x6   :  { %2108 = vmatprep.subr.bf16.mxu1 %v2222_v5  ;;  %v2230_v13 = vld [vmem:[%s3298_s2 + $0xe0] sm:$0xff]   ;;  %v2234_v17 = vld [vmem:[%s3298_s2 + $0xd8] sm:$0xff]   ;;  %v2238_v21 = vld [vmem:[%s3298_s2 + $0xd0] sm:$0xff]  }
   0x7   :  { %v2231_v14 = vld [vmem:[%s3298_s2 + $0x20] sm:$0xff]   ;;  %v2235_v18 = vld [vmem:[%s3298_s2 + $0x18] sm:$0xff]   ;;  %v2239_v22 = vld [vmem:[%s3298_s2 + $0x10] sm:$0xff]  }
   0x8   :  { %2087 = vmatpush3.bf16.msra.mxu0 %v2223_v6  ;;  %v2232_v15 = vld [vmem:[%s3298_s2 + $0xa0] sm:$0xff]   ;;  %v2236_v19 = vld [vmem:[%s3298_s2 + $0x98] sm:$0xff]   ;;  %v2240_v23 = vld [vmem:[%s3298_s2 + $0x90] sm:$0xff]  }
   0x9   :  { %2109 = vmatpush3.bf16.msra.mxu1 %v2224_v7  ;;  %2088 = vmatprep.subr.bf16.mxu0 %v2225_v8  ;;  %v2241_v24 = vld [vmem:[%s3298_s2 + $0x48] sm:$0xff]   ;;  %v2245_v28 = vld [vmem:[%s3298_s2 + $0x40] sm:$0xff]   ;;  %v2249_v40 = vld [vmem:[%s3298_s2 + $0x178] sm:$0xff]  }
   0xa   :  { %2110 = vmatprep.subr.bf16.mxu1 %v2226_v9  ;;  %v2242_v25 = vld [vmem:[%s3298_s2 + $0xc8] sm:$0xff]   ;;  %v2246_v29 = vld [vmem:[%s3298_s2 + $0xc0] sm:$0xff]   ;;  %v2250_v41 = vld [vmem:[%s3298_s2 + $0x1f8] sm:$0xff]  }
   0xb   :  { %v2243_v26 = vld [vmem:[%s3298_s2 + $0x8] sm:$0xff]   ;;  %v2247_v30 = vld [vmem:[%s3298_s2] sm:$0xff]   ;;  %v2251_v42 = vld [vmem:[%s3298_s2 + $0x138] sm:$0xff]  }
   0xc   :  { %2089 = vmatpush3.bf16.msra.mxu0 %v2227_v10  ;;  %v2244_v27 = vld [vmem:[%s3298_s2 + $0x88] sm:$0xff]   ;;  %v2248_v31 = vld [vmem:[%s3298_s2 + $0x80] sm:$0xff]   ;;  %v2252_v43 = vld [vmem:[%s3298_s2 + $0x1b8] sm:$0xff]  }
   0xd   :  { %2111 = vmatpush3.bf16.msra.mxu1 %v2228_v11  ;;  %2090 = vmatprep.subr.bf16.mxu0 %v2229_v12  ;;  %v36_v32 = vld [vmem:[%s3299_s0] sm:$0xff]  ;;  %v37_v34 = vld [vmem:[%s3299_s0 + $0x8] sm:$0xff]  ;;  %v2253_v44 = vld [vmem:[%s3298_s2 + $0x170] sm:$0xff]  }
   0xe   :  { %2112 = vmatprep.subr.bf16.mxu1 %v2230_v13  ;;  %v40_v33 = vld [vmem:[%s3299_s0 + $0x20] sm:$0xff]  ;;  %v41_v36 = vld [vmem:[%s3299_s0 + $0x28] sm:$0xff]  ;;  %v2254_v45 = vld [vmem:[%s3298_s2 + $0x1f0] sm:$0xff]  }
   0xf   :  { %v1934_v35 = vcombine.high %v36_v32, %v40_v33  ;;  %v1933_v37 = vcombine.low %v36_v32, %v40_v33  ;;  %v1936_v38 = vcombine.high %v37_v34, %v41_v36  ;;  %v1935_v39 = vcombine.low %v37_v34, %v41_v36  ;;  %v2255_v46 = vld [vmem:[%s3298_s2 + $0x130] sm:$0xff]   ;;  %v2257_v48 = vld [vmem:[%s3298_s2 + $0x168] sm:$0xff]   ;;  %v2261_v52 = vld [vmem:[%s3298_s2 + $0x160] sm:$0xff]  }
  0x10   :  { %2091 = vmatpush3.bf16.msra.mxu0 %v2231_v14  ;;  %v2256_v47 = vld [vmem:[%s3298_s2 + $0x1b0] sm:$0xff]   ;;  %v2258_v49 = vld [vmem:[%s3298_s2 + $0x1e8] sm:$0xff]   ;;  %v2262_v53 = vld [vmem:[%s3298_s2 + $0x1e0] sm:$0xff]  }
  0x11   :  { %2113 = vmatpush3.bf16.msra.mxu1 %v2232_v15  ;;  %2092 = vmatprep.subr.bf16.mxu0 %v2233_v16  ;;  %v2259_v50 = vld [vmem:[%s3298_s2 + $0x128] sm:$0xff]   ;;  %v2263_v54 = vld [vmem:[%s3298_s2 + $0x120] sm:$0xff]   ;;  %v2265_v56 = vld [vmem:[%s3298_s2 + $0x158] sm:$0xff]   ;;  %v2368_v16 = vmov 0.0  }
  0x12   :  { %2114 = vmatprep.subr.bf16.mxu1 %v2234_v17  ;;  %635 = vmatprep.mubr.bf16.mxu0 %v1934_v35  ;;  %v2260_v51 = vld [vmem:[%s3298_s2 + $0x1a8] sm:$0xff]   ;;  %v2264_v55 = vld [vmem:[%s3298_s2 + $0x1a0] sm:$0xff]   ;;  %v2266_v57 = vld [vmem:[%s3298_s2 + $0x1d8] sm:$0xff]  }
  0x13   :  { %676 = vmatprep.mubr.bf16.mxu1 %v1936_v38  ;;  %v2267_v58 = vld [vmem:[%s3298_s2 + $0x118] sm:$0xff]   ;;  %v2269_v60 = vld [vmem:[%s3298_s2 + $0x150] sm:$0xff]   ;;  %v2273_v0 = vld [vmem:[%s3298_s2 + $0x148] sm:$0xff]  }
  0x14   :  { %2093 = vmatpush3.bf16.msra.mxu0 %v2235_v18  ;;  %v2268_v59 = vld [vmem:[%s3298_s2 + $0x198] sm:$0xff]   ;;  %v2270_v61 = vld [vmem:[%s3298_s2 + $0x1d0] sm:$0xff]   ;;  %v2274_v1 = vld [vmem:[%s3298_s2 + $0x1c8] sm:$0xff]  }
  0x15   :  { %2115 = vmatpush3.bf16.msra.mxu1 %v2236_v19  ;;  %2094 = vmatprep.subr.bf16.mxu0 %v2237_v20  ;;  %v2271_v62 = vld [vmem:[%s3298_s2 + $0x110] sm:$0xff]   ;;  %v2275_v2 = vld [vmem:[%s3298_s2 + $0x108] sm:$0xff]   ;;  %v2277_v4 = vld [vmem:[%s3298_s2 + $0x140] sm:$0xff]  }
  0x16   :  { %2116 = vmatprep.subr.bf16.mxu1 %v2238_v21  ;;  %v2272_v63 = vld [vmem:[%s3298_s2 + $0x190] sm:$0xff]   ;;  %v2276_v3 = vld [vmem:[%s3298_s2 + $0x188] sm:$0xff]   ;;  %v2278_v5 = vld [vmem:[%s3298_s2 + $0x1c0] sm:$0xff]  }
  0x17   :  { %v2279_v6 = vld [vmem:[%s3298_s2 + $0x100] sm:$0xff]   ;;  %v2635_v8 = vld [vmem:[%s3299_s0 + $0x10] sm:$0xff]  ;;  %v2647_v11 = vld [vmem:[%s3299_s0 + $0x18] sm:$0xff] }
  0x18   :  { %2095 = vmatpush3.bf16.msra.mxu0 %v2239_v22  ;;  %v2280_v7 = vld [vmem:[%s3298_s2 + $0x180] sm:$0xff]   ;;  %v2640_v9 = vld [vmem:[%s3299_s0 + $0x30] sm:$0xff]  ;;  %v2652_v12 = vld [vmem:[%s3299_s0 + $0x38] sm:$0xff] }
  0x19   :  { %2117 = vmatpush3.bf16.msra.mxu1 %v2240_v23  ;;  %2096 = vmatprep.subr.bf16.mxu0 %v2241_v24  ;;  %v1938_v10 = vcombine.high %v2635_v8, %v2640_v9  ;;  %v1937_v13 = vcombine.low %v2635_v8, %v2640_v9  ;;  %v1940_v14 = vcombine.high %v2647_v11, %v2652_v12  ;;  %v2281_v17 = vld [vmem:[%s3300_s4 + $0x38] sm:$0xff]   ;;  %v2282_v18 = vld [vmem:[%s3300_s4 + $0x30] sm:$0xff]   ;;  %v2283_v19 = vld [vmem:[%s3300_s4 + $0x28] sm:$0xff]  }
  0x1a   :  { %2118 = vmatprep.subr.bf16.mxu1 %v2242_v25  ;;  %v1939_v15 = vcombine.low %v2647_v11, %v2652_v12  ;;  %v2284_v20 = vld [vmem:[%s3300_s4 + $0x20] sm:$0xff]   ;;  %v2285_v21 = vld [vmem:[%s3300_s4 + $0x18] sm:$0xff]   ;;  %v2286_v22 = vld [vmem:[%s3300_s4 + $0x10] sm:$0xff]  }
  0x1b   :  { %v2287_v23 = vld [vmem:[%s3300_s4 + $0x8] sm:$0xff]   ;;  %v2288_v24 = vld [vmem:[%s3300_s4] sm:$0xff]  }
  0x1c   :  { %2097 = vmatpush3.bf16.msra.mxu0 %v2243_v26  ;;  %v886_v25 = vld [vmem:[%s3301_s1] sm:$0xff]  ;;  %v887_v26 = vld [vmem:[%s3301_s1 + $0x8] sm:$0xff] }
  0x1d   :  { %2119 = vmatpush3.bf16.msra.mxu1 %v2244_v27  ;;  %2098 = vmatprep.subr.bf16.mxu0 %v2245_v28  ;;  %v1932_v34 = vld [vmem:[%s3302_s3] ss:$0 sm:$0xff] }
  0x1e   :  { %2120 = vmatprep.subr.bf16.mxu1 %v2246_v29  ;;  %890 = vrot.lane.b32.xlu0 %v886_v25, %s2370_s14 }
  0x20   :  { %2099 = vmatpush3.bf16.msra.mxu0 %v2247_v30 }
  0x21   :  { %2121 = vmatpush3.bf16.msra.mxu1 %v2248_v31  ;;  %2128 = vmatprep.subr.bf16.mxu0 %v2249_v40 }
  0x22   :  { %2150 = vmatprep.subr.bf16.mxu1 %v2250_v41  ;;  %892 = vrot.lane.b32.xlu0 %v887_v26, %s2370_s14 }
  0x23   :  { %636 = vmatmul.mubr.bf16.vlgmr.msra.gmra.mxu0 %v1933_v37 }
  0x24   :  { %677 = vmatmul.mubr.bf16.vlgmr.msra.gmra.mxu1 %v1935_v39  ;;  %2129 = vmatpush3.bf16.msra.mxu0 %v2251_v42 }
  0x25   :  { %2151 = vmatpush3.bf16.msra.mxu1 %v2252_v43  ;;  %2130 = vmatprep.subr.bf16.mxu0 %v2253_v44 }
  0x26   :  { %2152 = vmatprep.subr.bf16.mxu1 %v2254_v45  ;;  %717 = vmatprep.mubr.bf16.mxu0 %v1938_v10 }
  0x27   :  { %758 = vmatprep.mubr.bf16.mxu1 %v1940_v14  ;;  %v2290_v14 = vld [vmem:[%s3304_s6] sm:$0xff]  }
  0x28   :  { %2131 = vmatpush3.bf16.msra.mxu0 %v2255_v46 }
  0x29   :  { %2153 = vmatpush3.bf16.msra.mxu1 %v2256_v47  ;;  %2132 = vmatprep.subr.bf16.mxu0 %v2257_v48 }
  0x2a   :  { %2154 = vmatprep.subr.bf16.mxu1 %v2258_v49 }
  0x2c   :  { %2133 = vmatpush3.bf16.msra.mxu0 %v2259_v50 }
  0x2d   :  { %2155 = vmatpush3.bf16.msra.mxu1 %v2260_v51  ;;  %2134 = vmatprep.subr.bf16.mxu0 %v2261_v52 }
  0x2e   :  { %2156 = vmatprep.subr.bf16.mxu1 %v2262_v53 }
  0x30   :  { %2135 = vmatpush3.bf16.msra.mxu0 %v2263_v54 }
  0x31   :  { %2157 = vmatpush3.bf16.msra.mxu1 %v2264_v55  ;;  %2136 = vmatprep.subr.bf16.mxu0 %v2265_v56 }
  0x32   :  { %2158 = vmatprep.subr.bf16.mxu1 %v2266_v57 }
  0x34   :  { %2137 = vmatpush3.bf16.msra.mxu0 %v2267_v58 }
  0x35   :  { %2159 = vmatpush3.bf16.msra.mxu1 %v2268_v59  ;;  %2138 = vmatprep.subr.bf16.mxu0 %v2269_v60 }
  0x36   :  { %2160 = vmatprep.subr.bf16.mxu1 %v2270_v61 }
  0x38   :  { %2139 = vmatpush3.bf16.msra.mxu0 %v2271_v62 }
  0x39   :  { %2161 = vmatpush3.bf16.msra.mxu1 %v2272_v63  ;;  %2140 = vmatprep.subr.bf16.mxu0 %v2273_v0  ;;  %v2005_v63 = vld [vmem:[%s3303_s5] ss:$0 sm:$0xff] }
  0x3a   :  { %2162 = vmatprep.subr.bf16.mxu1 %v2274_v1 }
  0x3c   :  { %2141 = vmatpush3.bf16.msra.mxu0 %v2275_v2 }
  0x3d   :  { %2163 = vmatpush3.bf16.msra.mxu1 %v2276_v3  ;;  %2142 = vmatprep.subr.bf16.mxu0 %v2277_v4 }
  0x3e   :  { %2164 = vmatprep.subr.bf16.mxu1 %v2278_v5 }
  0x40   :  { %2143 = vmatpush3.bf16.msra.mxu0 %v2279_v6 }
  0x41   :  { %2165 = vmatpush3.bf16.msra.mxu1 %v2280_v7  ;;  %2184 = vmatprep.subr.bf16.mxu0 %v2368_v16 }
  0x42   :  { %2204 = vmatprep.subr.bf16.mxu1 %v2368_v16 }
  0x43   :  { %718 = vmatmul.mubr.bf16.vlgmr.msra.gmra.mxu0 %v1937_v13  ;;  %v2289_v13 = vld [vmem:[%s3304_s6 + $0x8] sm:$0xff]  }
  0x44   :  { %759 = vmatmul.mubr.bf16.vlgmr.msra.gmra.mxu1 %v1939_v15  ;;  %2185 = vmatpush3.bf16.msra.mxu0 %v2281_v17 }
  0x45   :  { %2186 = vmatprep.subr.bf16.mxu0 %v2368_v16  ;;  %2200 = vmatprep.mubr.msk.bf16.mxu0 %vm2369_vm0, %v2368_v16 }
  0x46   :  { %2208 = vmatprep.mubr.msk.bf16.mxu1 %vm2369_vm0, %v2368_v16  ;;  %2205 = vmatpush3.bf16.msra.mxu1 %v2289_v13  ;;  %v1005_v13 = vld [vmem:[%s3305_s8 + $0xc8] sm:$0xff] }
  0x47   :  { %2206 = vmatprep.subr.bf16.mxu1 %v2368_v16 }
  0x48   :  { %2187 = vmatpush3.bf16.msra.mxu0 %v2282_v18 }
  0x49   :  { %2188 = vmatprep.subr.bf16.mxu0 %v2368_v16 }
  0x4a   :  { %2207 = vmatpush3.bf16.msra.mxu1 %v2290_v14  ;;  %v1009_v14 = vld [vmem:[%s3305_s8 + $0xe8] sm:$0xff] }
  0x4c   :  { %2189 = vmatpush3.bf16.msra.mxu0 %v2283_v19 }
  0x4d   :  { %2190 = vmatprep.subr.bf16.mxu0 %v2368_v16 }
  0x50   :  { %2191 = vmatpush3.bf16.msra.mxu0 %v2284_v20 }
  0x51   :  { %2192 = vmatprep.subr.bf16.mxu0 %v2368_v16 }
  0x54   :  { %2193 = vmatpush3.bf16.msra.mxu0 %v2285_v21 }
  0x55   :  { %2194 = vmatprep.subr.bf16.mxu0 %v2368_v16 }
  0x58   :  { %2195 = vmatpush3.bf16.msra.mxu0 %v2286_v22 }
  0x59   :  { %2196 = vmatprep.subr.bf16.mxu0 %v2368_v16 }
  0x5c   :  { %2197 = vmatpush3.bf16.msra.mxu0 %v2287_v23 }
  0x5d   :  { %2198 = vmatprep.subr.bf16.mxu0 %v2368_v16 }
  0x60   :  { %2199 = vmatpush3.bf16.msra.mxu0 %v2288_v24 }
  0x90   :  { %v891_v15 = vpop.permute.xlu0 %890 }
  0x94   :  { %v893_v19 = vpop.permute.xlu0 %892 }
  0xe3   :  { %v2100_v27 = vpop.f32.mrf.mxu0 }
  0xe4   :  { %v2122_v28 = vpop.f32.mrf.mxu1 }
  0xe5   :  { %v2101_v29 = vpop.f32.mrf.mxu0 }
  0xe6   :  { %v2123_v30 = vpop.f32.mrf.mxu1  ;;  %v2102_v32 = vadd.f32 %v2101_v29, %v2100_v27 }
  0xe7   :  { %v2103_v31 = vpop.f32.mrf.mxu0  ;;  %v2124_v37 = vadd.f32 %v2123_v30, %v2122_v28 }
  0xe8   :  { %v2125_v33 = vpop.f32.mrf.mxu1  ;;  %v638_v36 = vadd.f32 %v2102_v32, %v1932_v34 }
  0xe9   :  { %v2104_v35 = vpop.f32.mrf.mxu0 }
  0xea   :  { %v2105_v38 = vadd.f32 %v2104_v35, %v2103_v31  ;;  %v2126_v39 = vpop.f32.mrf.mxu1  ;;  %v679_v43 = vadd.f32 %v2124_v37, %v638_v36  ;;  %v1040_v35 = vld [vmem:[%s3305_s8 + $0x1e0] sm:$0xff]  ;;  %v1037_v36 = vld [vmem:[%s3305_s8 + $0x1c8] sm:$0xff] }
  0xeb   :  { %v2127_v48 = vadd.f32 %v2126_v39, %v2125_v33 }
  0xec   :  { %v641_v44 = vadd.f32 %v2105_v38, %v1932_v34  ;;  %v1036_v34 = vld [vmem:[%s3305_s8 + $0x1c0] sm:$0xff] }
  0xed   :  { %v2075_v39 = vcombine.high %v1036_v34, %v1040_v35 }
  0xee   :  { %v682_v52 = vadd.f32 %v2127_v48, %v641_v44 }
  0xef   :  { %1406 = vmatprep.subr.bf16.mxu1 %v2075_v39  ;;  %v980_v39 = vld [vmem:[%s3305_s8] sm:$0xff] }
 0x103   :  { %v2144_v40 = vpop.f32.mrf.mxu0 }
 0x104   :  { %v2166_v41 = vpop.f32.mrf.mxu1 }
 0x105   :  { %v2145_v42 = vpop.f32.mrf.mxu0 }
 0x106   :  { %v2146_v45 = vadd.f32 %v2145_v42, %v2144_v40  ;;  %v2167_v46 = vpop.f32.mrf.mxu1  ;;  %v1041_v40 = vld [vmem:[%s3305_s8 + $0x1e8] sm:$0xff]  ;;  %v1032_v42 = vld [vmem:[%s3305_s8 + $0x1a0] sm:$0xff] }
 0x107   :  { %v2147_v47 = vpop.f32.mrf.mxu0  ;;  %v2168_v53 = vadd.f32 %v2167_v46, %v2166_v41  ;;  %v1028_v41 = vld [vmem:[%s3305_s8 + $0x180] sm:$0xff]  ;;  %v2076_v44 = vcombine.low %v1037_v36, %v1041_v40  ;;  %v1029_v46 = vld [vmem:[%s3305_s8 + $0x188] sm:$0xff] }
 0x108   :  { %v720_v49 = vadd.f32 %v2146_v45, %v679_v43  ;;  %v2169_v50 = vpop.f32.mrf.mxu1  ;;  %v2074_v43 = vcombine.low %v1036_v34, %v1040_v35  ;;  %v2077_v45 = vcombine.high %v1037_v36, %v1041_v40  ;;  %v993_v35 = vld [vmem:[%s3305_s8 + $0x68] sm:$0xff]  ;;  %v984_v40 = vld [vmem:[%s3305_s8 + $0x20] sm:$0xff] }
 0x109   :  { %v2148_v51 = vpop.f32.mrf.mxu0 }
 0x10a   :  { %v2149_v54 = vadd.f32 %v2148_v51, %v2147_v47  ;;  %v2170_v55 = vpop.f32.mrf.mxu1  ;;  %v761_v56 = vadd.f32 %v2168_v53, %v720_v49  ;;  %v1033_v47 = vld [vmem:[%s3305_s8 + $0x1a8] sm:$0xff]  ;;  %v2067_v49 = vcombine.high %v1028_v41, %v1032_v42  ;;  %1449 = vmatprep.subr.bf16.mxu0 %v2077_v45 }
 0x10b   :  { %v2171_v58 = vadd.f32 %v2170_v55, %v2169_v50  ;;  %v2069_v50 = vcombine.high %v1029_v46, %v1033_v47  ;;  %v1021_v51 = vld [vmem:[%s3305_s8 + $0x148] sm:$0xff]  ;;  %v1020_v55 = vld [vmem:[%s3305_s8 + $0x140] sm:$0xff] }
 0x10c   :  { %v723_v57 = vadd.f32 %v2149_v54, %v682_v52  ;;  %v767_v60 = vmax.f32 %v761_v56, 0.0  ;;  %v1025_v52 = vld [vmem:[%s3305_s8 + $0x168] sm:$0xff]  ;;  %v1024_v56 = vld [vmem:[%s3305_s8 + $0x160] sm:$0xff] }
 0x10e   :  { %v764_v59 = vadd.f32 %v2171_v58, %v723_v57  ;;  %v2068_v58 = vcombine.low %v1029_v46, %v1033_v47  ;;  %v1038_v47 = vld [vmem:[%s3305_s8 + $0x1d0] sm:$0xff] }
 0x110   :  { %v768_v61 = vmax.f32 %v764_v59, 0.0  ;;  %v2066_v59 = vcombine.low %v1028_v41, %v1032_v42  ;;  %v981_v41 = vld [vmem:[%s3305_s8 + $0x8] sm:$0xff]  ;;  %v2019_v42 = vcombine.high %v980_v39, %v984_v40 }
 0x112   :  { %v769_v62 = vpack.c.bf16 %v768_v61, %v767_v60  ;;  %v2061_v60 = vcombine.high %v1021_v51, %v1025_v52 }
 0x114   :  { %2201 = vmatmul.mubr.bf16.vlgmr.msra.gmra.mxu0 %v769_v62  ;;  %v2059_v62 = vcombine.high %v1020_v55, %v1024_v56 }
 0x115   :  { %1450 = vmatpush1.bf16.msra.mxu0 %v2076_v44  ;;  %v2018_v44 = vcombine.low %v980_v39, %v984_v40  ;;  %v1003_v39 = vld [vmem:[%s3305_s8 + $0xb8] sm:$0xff] }
 0x116   :  { %1451 = vmatprep.subr.bf16.mxu0 %v2069_v50 }
 0x119   :  { %1452 = vmatpush1.bf16.msra.mxu0 %v2068_v58 }
 0x11a   :  { %1453 = vmatprep.subr.bf16.mxu0 %v2061_v60 }
 0x1d4   :  { %v875_v0 = vpop.f32.mrf.mxu0 }
 0x1d5   :  { %v876_v1 = vadd.f32 %v2005_v63, %v875_v0  ;;  %v1017_v0 = vld [vmem:[%s3305_s8 + $0x128] sm:$0xff] }
 0x1d6   :  { %v2202_v2 = vpop.f32.mrf.mxu0 }
 0x1d7   :  { %v882_v3 = vmul.f32 1.442695, %v876_v1  ;;  %v1893_v4 = vmul.f32 %v876_v1, %v876_v1  ;;  %v1887_v16 = vmul.f32 2.0, %v876_v1  ;;  %v1016_v2 = vld [vmem:[%s3305_s8 + $0x120] sm:$0xff] }
 0x1d8   :  { %v878_v5 = vpop.f32.mrf.mxu0 }
 0x1d9   :  { %2291 = vpow2.f32 %v882_v3  ;;  %v879_v6 = vadd.f32 %v2005_v63, %v878_v5  ;;  %1897 = vrot.lane.b32.xlu0 %v1893_v4, %s2370_s14  ;;  %v1889_v23 = vmul.f32 1.442695, %v1887_v16  ;;  %v1013_v63 = vld [vmem:[%s3305_s8 + $0x108] sm:$0xff]  ;;  %v2060_v4 = vcombine.low %v1021_v51, %v1025_v52  ;;  %v1043_v52 = vld [vmem:[%s3305_s8 + $0x1f8] sm:$0xff] }
 0x1da   :  { %v2203_v7 = vpop.f32.mrf.mxu0  ;;  %v2058_v5 = vcombine.low %v1020_v55, %v1024_v56  ;;  %v2014_v56 = vld [vmem:[%s3306_s7] ss:$0 sm:$0xff] }
 0x1db   :  { %v884_v10 = vmul.f32 1.442695, %v879_v6  ;;  %v1894_v22 = vmul.f32 %v879_v6, %v879_v6  ;;  %v1888_v28 = vmul.f32 2.0, %v879_v6  ;;  %1454 = vmatpush1.bf16.msra.mxu0 %v2060_v4 }
 0x1dd   :  { %2293 = vpow2.f32 %v884_v10  ;;  %v1891_v31 = vmul.f32 1.442695, %v1888_v28 }
 0x1de   :  { %2295 = vpow2.f32 %v1889_v23  ;;  %v996_v23 = vld [vmem:[%s3305_s8 + $0x80] sm:$0xff] }
 0x1df   :  { %2297 = vpow2.f32 %v1891_v31  ;;  %v988_v31 = vld [vmem:[%s3305_s8 + $0x40] sm:$0xff] }
 0x1e6   :  { %v2292_v17 = vpop.eup %2291 }
 0x1e7   :  { %v896_v18 = vmul.f32 %v2292_v17, %v891_v15  ;;  %v1004_v15 = vld [vmem:[%s3305_s8 + $0xc0] sm:$0xff] }
 0x1e8   :  { %v1008_v17 = vld [vmem:[%s3305_s8 + $0xe0] sm:$0xff] }
 0x1e9   :  { %900 = vrot.lane.b32.xlu1 %v896_v18, %s2371_s20  ;;  %v2052_v18 = vcombine.low %v1013_v63, %v1017_v0 }
 0x1ea   :  { %v2294_v20 = vpop.eup %2293 }
 0x1eb   :  { %v897_v21 = vmul.f32 %v2294_v20, %v893_v19  ;;  %v2296_v24 = vpop.eup %2295  ;;  %v2045_v20 = vcombine.high %v1005_v13, %v1009_v14 }
 0x1ec   :  { %v2298_v53 = vpop.eup %2297 }
 0x1ed   :  { %902 = vrot.lane.b32.xlu1 %v897_v21, %s2371_s20  ;;  %v2043_v21 = vcombine.high %v1004_v15, %v1008_v17 }
 0x1f1   :  { %1899 = vrot.lane.b32.xlu1 %v1894_v22, %s2370_s14  ;;  %v997_v22 = vld [vmem:[%s3305_s8 + $0x88] sm:$0xff] }
 0x24b   :  { %v1898_v25 = vpop.permute.xlu0 %1897 }
 0x24c   :  { %v1903_v26 = vadd.f32 %v2296_v24, %v1898_v25  ;;  %v1000_v24 = vld [vmem:[%s3305_s8 + $0xa0] sm:$0xff]  ;;  %v2044_v25 = vcombine.low %v1005_v13, %v1009_v14  ;;  %v1026_v13 = vld [vmem:[%s3305_s8 + $0x170] sm:$0xff]  ;;  %v1023_v14 = vld [vmem:[%s3305_s8 + $0x158] sm:$0xff] }
 0x24e   :  { %v2082_v27 = vadd.f32 -1.0, %v1903_v26  ;;  %v2042_v26 = vcombine.low %v1004_v15, %v1008_v17  ;;  %v1027_v15 = vld [vmem:[%s3305_s8 + $0x178] sm:$0xff] }
 0x250   :  { %v1907_v29 = vsub.f32 %v2082_v27, %v1887_v16  ;;  %v1001_v16 = vld [vmem:[%s3305_s8 + $0xa8] sm:$0xff] }
 0x251   :  { %v2037_v27 = vcombine.high %v997_v22, %v1001_v16 }
 0x252   :  { %v1909_v30 = vmul.f32 0.5, %v1907_v29  ;;  %v2036_v29 = vcombine.low %v997_v22, %v1001_v16  ;;  %v1018_v22 = vld [vmem:[%s3305_s8 + $0x130] sm:$0xff]  ;;  %v1015_v16 = vld [vmem:[%s3305_s8 + $0x118] sm:$0xff] }
 0x254   :  { %1913 = vrot.lane.b32.xlu0 %v1909_v30, %s2371_s20  ;;  %v2034_v30 = vcombine.low %v996_v23, %v1000_v24 }
 0x25b   :  { %v901_v32 = vpop.permute.xlu1 %900 }
 0x25c   :  { %v906_v37 = vadd.f32 %v901_v32, %v876_v1  ;;  %v1012_v1 = vld [vmem:[%s3305_s8 + $0x100] sm:$0xff] }
 0x25d   :  { %v2051_v10 = vcombine.high %v1012_v1, %v1016_v2  ;;  %v2050_v19 = vcombine.low %v1012_v1, %v1016_v2  ;;  %v992_v32 = vld [vmem:[%s3305_s8 + $0x60] sm:$0xff]  ;;  %v1031_v1 = vld [vmem:[%s3305_s8 + $0x198] sm:$0xff] }
 0x25e   :  { %v2027_v34 = vcombine.high %v988_v31, %v992_v32  ;;  %v2026_v36 = vcombine.low %v988_v31, %v992_v32  ;;  %v1035_v2 = vld [vmem:[%s3305_s8 + $0x1b8] sm:$0xff] }
 0x25f   :  { %v903_v33 = vpop.permute.xlu1 %902  ;;  %v1011_v31 = vld [vmem:[%s3305_s8 + $0xf8] sm:$0xff] }
 0x260   :  { %v907_v38 = vadd.f32 %v903_v33, %v879_v6  ;;  %v2053_v6 = vcombine.high %v1013_v63, %v1017_v0  ;;  %v989_v33 = vld [vmem:[%s3305_s8 + $0x48] sm:$0xff]  ;;  %v1034_v0 = vld [vmem:[%s3305_s8 + $0x1b0] sm:$0xff] }
 0x262   :  { %v908_v48 = vpack.c.bf16 %v907_v38, %v906_v37  ;;  %1455 = vmatprep.subr.bf16.mxu0 %v2053_v6  ;;  %v2028_v37 = vcombine.low %v989_v33, %v993_v35  ;;  %v2029_v38 = vcombine.high %v989_v33, %v993_v35 }
 0x263   :  { %v1900_v54 = vpop.permute.xlu1 %1899  ;;  %1456 = vmatpush1.bf16.msra.mxu0 %v2052_v18  ;;  %v2072_v18 = vcombine.low %v1031_v1, %v1035_v2 }
 0x264   :  { %v1904_v57 = vadd.f32 %v2298_v53, %v1900_v54  ;;  %2209 = vmatmul.mubr.msk.bf16.vlgmr.msra.gmra.mxu1 %vm932_vm1, %v908_v48  ;;  %1457 = vmatprep.subr.bf16.mxu0 %v2045_v20  ;;  %v1042_v48 = vld [vmem:[%s3305_s8 + $0x1f0] sm:$0xff]  ;;  %v2372_v53 = vmov 0   ;;  %v2065_v20 = vcombine.high %v1023_v14, %v1027_v15 }
 0x265   :  { %1407 = vmatpush1.bf16.msra.mxu1 %v2074_v43  ;;  %v985_v43 = vld [vmem:[%s3305_s8 + $0x28] sm:$0xff]  ;;  %v2078_v50 = vcombine.low %v1038_v47, %v1042_v48  ;;  %v2079_v51 = vcombine.high %v1038_v47, %v1042_v48  ;;  %1438 = vmatprep.mubr.bf16.mxu1 %v2372_v53  ;;  %v995_v47 = vld [vmem:[%s3305_s8 + $0x78] sm:$0xff] }
 0x266   :  { %v2083_v61 = vadd.f32 -1.0, %v1904_v57  ;;  %1408 = vmatprep.subr.bf16.mxu1 %v2067_v49  ;;  %v2020_v45 = vcombine.low %v981_v41, %v985_v43  ;;  %v2021_v46 = vcombine.high %v981_v41, %v985_v43  ;;  %v1039_v49 = vld [vmem:[%s3305_s8 + $0x1d8] sm:$0xff]  ;;  %1481 = vmatprep.mubr.bf16.mxu0 %v2372_v53 }
 0x267   :  { %1458 = vmatpush1.bf16.msra.mxu0 %v2044_v25  ;;  %v2080_v54 = vcombine.low %v1039_v49, %v1043_v52  ;;  %v2081_v55 = vcombine.high %v1039_v49, %v1043_v52  ;;  %v2064_v25 = vcombine.low %v1023_v14, %v1027_v15  ;;  %v982_v52 = vld [vmem:[%s3305_s8 + $0x10] sm:$0xff] }
 0x268   :  { %v1908_v3 = vsub.f32 %v2083_v61, %v1888_v28  ;;  %v2035_v28 = vcombine.high %v996_v23, %v1000_v24  ;;  %1459 = vmatprep.subr.bf16.mxu0 %v2037_v27  ;;  %v1019_v23 = vld [vmem:[%s3305_s8 + $0x138] sm:$0xff] }
 0x269   :  { %1409 = vmatpush1.bf16.msra.mxu1 %v2066_v59  ;;  %v2057_v27 = vcombine.high %v1015_v16, %v1019_v23  ;;  %v2056_v33 = vcombine.low %v1015_v16, %v1019_v23 }
 0x26a   :  { %v1910_v7 = vmul.f32 0.5, %v1908_v3  ;;  %1410 = vmatprep.subr.bf16.mxu1 %v2059_v62  ;;  %v1030_v62 = vld [vmem:[%s3305_s8 + $0x190] sm:$0xff] }
 0x26b   :  { %1460 = vmatpush1.bf16.msra.mxu0 %v2036_v29  ;;  %v2071_v6 = vcombine.high %v1030_v62, %v1034_v0  ;;  %v2070_v17 = vcombine.low %v1030_v62, %v1034_v0  ;;  %v1010_v29 = vld [vmem:[%s3305_s8 + $0xf0] sm:$0xff]  ;;  %v1046_v62 = vlaneseq }
 0x26c   :  { %1915 = vrot.lane.b32.xlu1 %v1910_v7, %s2371_s20  ;;  %1461 = vmatprep.subr.bf16.mxu0 %v2029_v38  ;;  %v2073_v7 = vcombine.high %v1031_v1, %v1035_v2  ;;  %v999_v38 = vld [vmem:[%s3305_s8 + $0x98] sm:$0xff]  ;;  %v2930_v1 = vld [vmem:[%s3307_s9] sm:$0xff] }
 0x26d   :  { %1411 = vmatpush1.bf16.msra.mxu1 %v2058_v5  ;;  %v2041_v43 = vcombine.high %v999_v38, %v1003_v39  ;;  %v2040_v49 = vcombine.low %v999_v38, %v1003_v39 }
 0x26e   :  { %1412 = vmatprep.subr.bf16.mxu1 %v2051_v10  ;;  %v1022_v10 = vld [vmem:[%s3305_s8 + $0x150] sm:$0xff] }
 0x26f   :  { %1462 = vmatpush1.bf16.msra.mxu0 %v2028_v37  ;;  %v2062_v24 = vcombine.low %v1022_v10, %v1026_v13  ;;  %v1002_v37 = vld [vmem:[%s3305_s8 + $0xb0] sm:$0xff] }
 0x270   :  { %1463 = vmatprep.subr.bf16.mxu0 %v2021_v46  ;;  %v991_v46 = vld [vmem:[%s3305_s8 + $0x58] sm:$0xff] }
 0x271   :  { %1413 = vmatpush1.bf16.msra.mxu1 %v2050_v19  ;;  %v2063_v19 = vcombine.high %v1022_v10, %v1026_v13 }
 0x272   :  { %1414 = vmatprep.subr.bf16.mxu1 %v2043_v21  ;;  %v1014_v21 = vld [vmem:[%s3305_s8 + $0x110] sm:$0xff] }
 0x273   :  { %1464 = vmatpush1.bf16.msra.mxu0 %v2020_v45  ;;  %v2054_v32 = vcombine.low %v1014_v21, %v1018_v22  ;;  %v994_v45 = vld [vmem:[%s3305_s8 + $0x70] sm:$0xff] }
 0x274   :  { %1535 = vmatprep.subr.bf16.mxu0 %v2081_v55  ;;  %v987_v55 = vld [vmem:[%s3305_s8 + $0x38] sm:$0xff] }
 0x275   :  { %1415 = vmatpush1.bf16.msra.mxu1 %v2042_v26  ;;  %v2055_v26 = vcombine.high %v1014_v21, %v1018_v22 }
 0x276   :  { %1416 = vmatprep.subr.bf16.mxu1 %v2035_v28  ;;  %v1006_v28 = vld [vmem:[%s3305_s8 + $0xd0] sm:$0xff] }
 0x277   :  { %v2046_v40 = vcombine.low %v1006_v28, %v1010_v29 }
 0x279   :  { %1417 = vmatpush1.bf16.msra.mxu1 %v2034_v30  ;;  %v1007_v30 = vld [vmem:[%s3305_s8 + $0xd8] sm:$0xff] }
 0x27a   :  { %1418 = vmatprep.subr.bf16.mxu1 %v2027_v34  ;;  %v2047_v34 = vcombine.high %v1006_v28, %v1010_v29  ;;  %v2049_v35 = vcombine.high %v1007_v30, %v1011_v31  ;;  %v2048_v41 = vcombine.low %v1007_v30, %v1011_v31 }
 0x27d   :  { %1419 = vmatpush1.bf16.msra.mxu1 %v2026_v36  ;;  %v998_v36 = vld [vmem:[%s3305_s8 + $0x90] sm:$0xff] }
 0x27e   :  { %1420 = vmatprep.subr.bf16.mxu1 %v2019_v42  ;;  %v2039_v42 = vcombine.high %v998_v36, %v1002_v37  ;;  %v2038_v48 = vcombine.low %v998_v36, %v1002_v37 }
 0x281   :  { %1421 = vmatpush1.bf16.msra.mxu1 %v2018_v44  ;;  %v990_v44 = vld [vmem:[%s3305_s8 + $0x50] sm:$0xff] }
 0x282   :  { %1492 = vmatprep.subr.bf16.mxu1 %v2079_v51  ;;  %v2033_v51 = vcombine.high %v991_v46, %v995_v47 }
 0x324   :  { %v970_v57 = vpop.f32.mrf.mxu1 }
 0x325   :  { %v971_v59 = vadd.f32 %v2014_v56, %v970_v57  ;;  %v2032_v57 = vcombine.low %v991_v46, %v995_v47 }
 0x326   :  { %v2210_v58 = vpop.f32.mrf.mxu1 }
 0x327   :  { %v977_v3 = vmax.f32 %v971_v59, 0.0 }
 0x328   :  { %v973_v60 = vpop.f32.mrf.mxu1 }
 0x329   :  { %v974_v61 = vadd.f32 %v2014_v56, %v973_v60  ;;  %v2030_v56 = vcombine.low %v990_v44, %v994_v45 }
 0x32a   :  { %v2211_v63 = vpop.f32.mrf.mxu1 }
 0x32b   :  { %v978_v4 = vmax.f32 %v974_v61, 0.0  ;;  %v2924_v63 = vshrl.u32 %v1046_v62, 7 }
 0x32d   :  { %v2846_v5 = vpack.c.bf16 %v978_v4, %v977_v3  ;;  %v1048_v0 = vsub.s32 0, %v2924_v63  ;;  %v1052_v2 = vsub.s32 1, %v2924_v63 }
 0x32f   :  { %1439 = vmatmul.mubr.bf16.vlgmr.msra.gmra.mxu1 %v2846_v5  ;;  %1482 = vmatmul.mubr.bf16.vlgmr.msra.gmra.mxu0 %v2846_v5  ;;  %v1049_v4 = vrot.slane %v2930_v1, %v1048_v0 }
 0x330   :  { %1493 = vmatpush1.bf16.msra.mxu1 %v2078_v50  ;;  %1536 = vmatpush1.bf16.msra.mxu0 %v2080_v54  ;;  %v2031_v50 = vcombine.high %v990_v44, %v994_v45  ;;  %v983_v54 = vld [vmem:[%s3305_s8 + $0x18] sm:$0xff] }
 0x331   :  { %1494 = vmatprep.subr.bf16.mxu1 %v2071_v6  ;;  %1537 = vmatprep.subr.bf16.mxu0 %v2073_v7  ;;  %v2025_v59 = vcombine.high %v983_v54, %v987_v55  ;;  %v2024_v61 = vcombine.low %v983_v54, %v987_v55  ;;  %v1056_v6 = vsub.s32 2, %v2924_v63  ;;  %v1053_v7 = vrot.slane %v2930_v1, %v1052_v2  ;;  %v2365_v55 = vld [vmem:[%s3299_s0 + $0x20] sm:$0xff] }
 0x332   :  { %1524 = vmatprep.mubr.bf16.mxu1 %v2372_v53  ;;  %1567 = vmatprep.mubr.bf16.mxu0 %v2372_v53  ;;  %v986_v53 = vld [vmem:[%s3305_s8 + $0x30] sm:$0xff]  ;;  %v1587_v0 = vunpack.c.h.bf16 %v2365_v55 }
 0x333   :  { %v2023_v58 = vcombine.high %v982_v52, %v986_v53  ;;  %v2022_v60 = vcombine.low %v982_v52, %v986_v53  ;;  %v1057_v15 = vrot.slane %v2930_v1, %v1056_v6  ;;  %v1072_v53 = vsub.s32 6, %v2924_v63 }
 0x334   :  { %1495 = vmatpush1.bf16.msra.mxu1 %v2070_v17  ;;  %1538 = vmatpush1.bf16.msra.mxu0 %v2072_v18 }
 0x335   :  { %1496 = vmatprep.subr.bf16.mxu1 %v2063_v19  ;;  %1539 = vmatprep.subr.bf16.mxu0 %v2065_v20  ;;  %v2983_v6 = vrot.slane %v2930_v1, %v1072_v53 }
 0x338   :  { %1497 = vmatpush1.bf16.msra.mxu1 %v2062_v24  ;;  %1540 = vmatpush1.bf16.msra.mxu0 %v2064_v25 }
 0x339   :  { %1498 = vmatprep.subr.bf16.mxu1 %v2055_v26  ;;  %1541 = vmatprep.subr.bf16.mxu0 %v2057_v27 }
 0x33c   :  { %1499 = vmatpush1.bf16.msra.mxu1 %v2054_v32  ;;  %1542 = vmatpush1.bf16.msra.mxu0 %v2056_v33 }
 0x33d   :  { %1500 = vmatprep.subr.bf16.mxu1 %v2047_v34  ;;  %1543 = vmatprep.subr.bf16.mxu0 %v2049_v35 }
 0x340   :  { %1501 = vmatpush1.bf16.msra.mxu1 %v2046_v40  ;;  %1544 = vmatpush1.bf16.msra.mxu0 %v2048_v41 }
 0x341   :  { %1502 = vmatprep.subr.bf16.mxu1 %v2039_v42  ;;  %1545 = vmatprep.subr.bf16.mxu0 %v2041_v43  ;;  %v1064_v43 = vsub.s32 4, %v2924_v63 }
 0x344   :  { %1503 = vmatpush1.bf16.msra.mxu1 %v2038_v48  ;;  %1546 = vmatpush1.bf16.msra.mxu0 %v2040_v49  ;;  %v2363_v48 = vld [vmem:[%s3299_s0] sm:$0xff] }
 0x345   :  { %1504 = vmatprep.subr.bf16.mxu1 %v2031_v50  ;;  %1547 = vmatprep.subr.bf16.mxu0 %v2033_v51  ;;  %v1578_v49 = vunpack.c.l.bf16 %v2363_v48  ;;  %v2364_v50 = vld [vmem:[%s3299_s0 + $0x8] sm:$0xff]  ;;  %v1579_v52 = vunpack.c.h.bf16 %v2363_v48 }
 0x346   :  { %v1580_v51 = vunpack.c.l.bf16 %v2364_v50  ;;  %v1581_v54 = vunpack.c.h.bf16 %v2364_v50 }
 0x348   :  { %1505 = vmatpush1.bf16.msra.mxu1 %v2030_v56  ;;  %1548 = vmatpush1.bf16.msra.mxu0 %v2032_v57  ;;  %v1586_v56 = vunpack.c.l.bf16 %v2365_v55  ;;  %v2974_v57 = vrot.slane %v2930_v1, %v1064_v43 }
 0x349   :  { %1506 = vmatprep.subr.bf16.mxu1 %v2023_v58  ;;  %1549 = vmatprep.subr.bf16.mxu0 %v2025_v59 }
 0x34c   :  { %1507 = vmatpush1.bf16.msra.mxu1 %v2022_v60  ;;  %1550 = vmatpush1.bf16.msra.mxu0 %v2024_v61  ;;  %v2366_v61 = vld [vmem:[%s3299_s0 + $0x28] sm:$0xff] }
 0x34d   :  { %v1588_v62 = vunpack.c.l.bf16 %v2366_v61  ;;  %v1589_v2 = vunpack.c.h.bf16 %v2366_v61 }
 0x34f   :  { %1525 = vmatmul.mubr.bf16.vlgmr.msra.gmra.mxu1 %v2846_v5  ;;  %1568 = vmatmul.mubr.bf16.vlgmr.msra.gmra.mxu0 %v2846_v5  ;;  %v1060_v5 = vsub.s32 3, %v2924_v63 }
 0x351   :  { %v1061_v18 = vrot.slane %v2930_v1, %v1060_v5  ;;  %v1076_v5 = vsub.s32 7, %v2924_v63 }
 0x3ef   :  { %v1440_v3 = vpop.f32.mrf.mxu1  ;;  %v1483_v10 = vpop.f32.mrf.mxu0 }
 0x3f0   :  { %v2937_v14 = vadd.f32 %v1440_v3, %v1049_v4  ;;  %v2944_v21 = vadd.f32 %v1483_v10, %v1057_v15  ;;  %v1068_v3 = vsub.s32 5, %v2924_v63 }
 0x3f1   :  { %v1442_v13 = vpop.f32.mrf.mxu1  ;;  %v1485_v19 = vpop.f32.mrf.mxu0 }
 0x3f2   :  { %v2940_v17 = vadd.f32 %v1442_v13, %v1053_v7  ;;  %v1594_v20 = vand.u32 2147483647, %v2937_v14  ;;  %v2947_v23 = vadd.f32 %v1485_v19, %v1061_v18  ;;  %v1596_v26 = vand.u32 2147483647, %v2944_v21 }
 0x3f3   :  { %v1444_v22 = vpop.f32.mrf.mxu1  ;;  %v1487_v34 = vpop.f32.mrf.mxu0  ;;  %v1802_v10 = vmax.f32 %v2937_v14, 0.0  ;;  %v1818_v13 = vmul.f32 %v1578_v49, %v2937_v14  ;;  %v2997_v63 = vrot.slane %v2930_v1, %v1068_v3  ;;  %v1583_v14 = vunpack.c.h.bf16 %v2635_v8 }
 0x3f4   :  { %v1595_v16 = vand.u32 2147483647, %v2940_v17  ;;  %v2949_v24 = vadd.f32 %v1444_v22, %v1049_v4  ;;  %v1610_v25 = vsub.f32 0.0, %v1594_v20  ;;  %v1597_v29 = vand.u32 2147483647, %v2947_v23 }
 0x3f5   :  { %v1446_v27 = vpop.f32.mrf.mxu1  ;;  %v1612_v33 = vsub.f32 0.0, %v1596_v26  ;;  %v2956_v38 = vadd.f32 %v1487_v34, %v1057_v15  ;;  %v1489_v41 = vpop.f32.mrf.mxu0  ;;  %v1582_v4 = vunpack.c.l.bf16 %v2635_v8  ;;  %v1804_v15 = vmax.f32 %v2944_v21, 0.0 }
 0x3f6   :  { %v1611_v28 = vsub.f32 0.0, %v1595_v16  ;;  %v1602_v30 = vand.u32 2147483647, %v2949_v24  ;;  %v2954_v31 = vadd.f32 %v1446_v27, %v1053_v7  ;;  %v1626_v32 = vmul.f32 1.442695, %v1610_v25 }
 0x3f7   :  { %v1613_v36 = vsub.f32 0.0, %v1597_v29  ;;  %v1630_v40 = vmul.f32 1.442695, %v1612_v33  ;;  %v1604_v45 = vand.u32 2147483647, %v2956_v38  ;;  %v2961_v47 = vadd.f32 %v1489_v41, %v1061_v18 }
 0x3f8   :  { %v1628_v35 = vmul.f32 1.442695, %v1611_v28  ;;  %v1618_v37 = vsub.f32 0.0, %v1602_v30  ;;  %v1603_v39 = vand.u32 2147483647, %v2954_v31  ;;  %2299 = vpow2.f32 %v1626_v32 }
 0x3f9   :  { %v1632_v42 = vmul.f32 1.442695, %v1613_v36  ;;  %v1620_v58 = vsub.f32 0.0, %v1604_v45  ;;  %v1605_v60 = vand.u32 2147483647, %v2961_v47  ;;  %v1584_v7 = vunpack.c.l.bf16 %v2647_v11 }
 0x3fa   :  { %2301 = vpow2.f32 %v1628_v35  ;;  %v1642_v44 = vmul.f32 1.442695, %v1618_v37  ;;  %v1619_v46 = vsub.f32 0.0, %v1603_v39  ;;  %v1820_v18 = vmul.f32 %v1580_v51, %v2944_v21 }
 0x3fb   :  { %2303 = vpow2.f32 %v1630_v40  ;;  %v1646_v20 = vmul.f32 1.442695, %v1620_v58  ;;  %v1621_v22 = vsub.f32 0.0, %v1605_v60  ;;  %v1803_v25 = vmax.f32 %v2940_v17, 0.0 }
 0x3fc   :  { %2305 = vpow2.f32 %v1632_v42  ;;  %v1644_v59 = vmul.f32 1.442695, %v1619_v46  ;;  %v1819_v26 = vmul.f32 %v1579_v52, %v2940_v17  ;;  %v1805_v21 = vmax.f32 %v2947_v23, 0.0 }
 0x3fd   :  { %2307 = vpow2.f32 %v1642_v44  ;;  %v1821_v28 = vmul.f32 %v1581_v54, %v2947_v23  ;;  %v3005_v29 = vrot.slane %v2930_v1, %v1076_v5  ;;  %v1585_v30 = vunpack.c.h.bf16 %v2647_v11 }
 0x3fe   :  { %2309 = vpow2.f32 %v1644_v59  ;;  %v3008_v32 = vsub.f32 %v1802_v10, %v1818_v13  ;;  %v1590_v17 = vunpack.c.l.bf16 %v2640_v9  ;;  %v3015_v37 = vsub.f32 %v1804_v15, %v1820_v18 }
 0x3ff   :  { %2311 = vpow2.f32 %v1646_v20  ;;  %v1648_v23 = vmul.f32 1.442695, %v1621_v22  ;;  %v3019_v41 = vsub.f32 %v1803_v25, %v1819_v26  ;;  %v1810_v42 = vmax.f32 %v2949_v24, 0.0 }
 0x400   :  { %v1826_v43 = vmul.f32 %v1586_v56, %v2949_v24  ;;  %v3025_v45 = vsub.f32 %v1805_v21, %v1821_v28  ;;  %v1812_v46 = vmax.f32 %v2956_v38, 0.0  ;;  %v1828_v51 = vmul.f32 %v1588_v62, %v2956_v38 }
 0x401   :  { %v1811_v52 = vmax.f32 %v2954_v31, 0.0  ;;  %v1827_v54 = vmul.f32 %v1587_v0, %v2954_v31  ;;  %2313 = vpow2.f32 %v1648_v23  ;;  %v1813_v38 = vmax.f32 %v2961_v47, 0.0 }
 0x402   :  { %v1829_v60 = vmul.f32 %v1589_v2, %v2961_v47  ;;  %v3047_v62 = vsub.f32 %v1810_v42, %v1826_v43  ;;  %v3050_v5 = vsub.f32 %v1812_v46, %v1828_v51 }
 0x403   :  { %v3055_v47 = vsub.f32 %v1811_v52, %v1827_v54 }
 0x404   :  { %v3059_v20 = vsub.f32 %v1813_v38, %v1829_v60 }
 0x405   :  { %v3000_v27 = vpop.eup %2299 }
 0x406   :  { %v1658_v40 = vadd.f32 1.0, %v3000_v27  ;;  %v1661_v61 = vmul.f32 -0.5, %v3000_v27 }
 0x407   :  { %v3013_v36 = vpop.eup %2301 }
 0x408   :  { %v3023_v44 = vpop.eup %2303  ;;  %v1667_v50 = vadd.f32 1.0, %v3013_v36  ;;  %2315 = vlog2.f32 %v1658_v40  ;;  %v1662_v26 = vadd.f32 1.0, %v1661_v61  ;;  %v1670_v21 = vmul.f32 -0.5, %v3013_v36 }
 0x409   :  { %v3037_v24 = vpop.eup %2305  ;;  %v1676_v59 = vadd.f32 1.0, %v3023_v44  ;;  %v1679_v15 = vmul.f32 -0.5, %v3023_v44  ;;  %v1673_v52 = vand.u32 2147483647, %v3013_v36 }
 0x40a   :  { %v3041_v58 = vpop.eup %2307  ;;  %v1685_v0 = vadd.f32 1.0, %v3037_v24  ;;  %v3077_v51 = vmul.f32 %v3000_v27, %v1662_v26 }
 0x40b   :  { %v1730_v18 = vadd.f32 1.0, %v3041_v58  ;;  %v1733_v54 = vmul.f32 -0.5, %v3041_v58  ;;  %vm3097_vm3 = vcmp.lt.f32.partialorder %v1673_v52, 0.0004427343  ;;  %v1736_v26 = vand.u32 2147483647, %v3041_v58 }
 0x40d   :  { %vm3134_vm6 = vcmp.lt.f32.partialorder %v1736_v26, 0.0004427343 }
 0x40f   :  { %v1526_v19 = vpop.f32.mrf.mxu1  ;;  %v1569_v33 = vpop.f32.mrf.mxu0 }
 0x410   :  { %v2992_v16 = vadd.f32 %v1526_v19, %v2974_v57  ;;  %v3029_v49 = vadd.f32 %v1569_v33, %v2983_v6  ;;  %v3057_v19 = vpop.eup %2309  ;;  %v1688_v33 = vmul.f32 -0.5, %v3037_v24 }
 0x411   :  { %v1528_v39 = vpop.f32.mrf.mxu1  ;;  %v1571_v31 = vpop.f32.mrf.mxu0  ;;  %v1739_v40 = vadd.f32 1.0, %v3057_v19 }
 0x412   :  { %v1598_v1 = vand.u32 2147483647, %v2992_v16  ;;  %v3035_v53 = vadd.f32 %v1528_v39, %v2997_v63  ;;  %v1600_v56 = vand.u32 2147483647, %v3029_v49  ;;  %v3062_v25 = vadd.f32 %v1571_v31, %v3005_v29  ;;  %v3072_v46 = vpop.eup %2311 }
 0x413   :  { %v1530_v13 = vpop.f32.mrf.mxu1  ;;  %v1680_v39 = vadd.f32 1.0, %v1679_v15  ;;  %v1573_v43 = vpop.f32.mrf.mxu0  ;;  %v1748_v31 = vadd.f32 1.0, %v3072_v46  ;;  %v1751_v15 = vmul.f32 -0.5, %v3072_v46 }
 0x414   :  { %v1614_v48 = vsub.f32 0.0, %v1598_v1  ;;  %v1616_v3 = vsub.f32 0.0, %v1600_v56  ;;  %v1599_v10 = vand.u32 2147483647, %v3035_v53  ;;  %v3066_v28 = vadd.f32 %v1530_v13, %v2974_v57 }
 0x415   :  { %v1601_v1 = vand.u32 2147483647, %v3062_v25  ;;  %v1682_v57 = vand.u32 2147483647, %v3023_v44  ;;  %v1671_v56 = vadd.f32 1.0, %v1670_v21  ;;  %v3082_v60 = vadd.f32 %v1573_v43, %v2983_v6  ;;  %v1532_v61 = vpop.f32.mrf.mxu1 }
 0x416   :  { %v1634_v55 = vmul.f32 1.442695, %v1614_v48  ;;  %v1638_v2 = vmul.f32 1.442695, %v1616_v3  ;;  %v1615_v22 = vsub.f32 0.0, %v1599_v10  ;;  %v3085_v3 = vmul.f32 %v3023_v44, %v1680_v39  ;;  %v3088_v10 = vpop.eup %2313 }
 0x417   :  { %v1606_v42 = vand.u32 2147483647, %v3066_v28  ;;  %v1664_v48 = vand.u32 2147483647, %v3000_v27  ;;  %v1691_v13 = vand.u32 2147483647, %v3037_v24  ;;  %v2316_v6 = vpop.eup %2315  ;;  %v3103_v21 = vadd.f32 %v1532_v61, %v2997_v63 }
 0x418   :  { %2317 = vpow2.f32 %v1634_v55  ;;  %v1636_v23 = vmul.f32 1.442695, %v1615_v22  ;;  %v1734_v22 = vadd.f32 1.0, %v1733_v54  ;;  %v1754_v43 = vand.u32 2147483647, %v3072_v46 }
 0x419   :  { %2319 = vlog2.f32 %v1667_v50  ;;  %v1617_v50 = vsub.f32 0.0, %v1601_v1  ;;  %v1622_v55 = vsub.f32 0.0, %v1606_v42  ;;  %vm3093_vm2 = vcmp.lt.f32.partialorder %v1664_v48, 0.0004427343 }
 0x41a   :  { %2321 = vlog2.f32 %v1676_v59  ;;  %v1689_v59 = vadd.f32 1.0, %v1688_v33  ;;  %v1742_v48 = vmul.f32 -0.5, %v3057_v19  ;;  %v1757_v52 = vadd.f32 1.0, %v3088_v10 }
 0x41b   :  { %2323 = vpow2.f32 %v1638_v2  ;;  %v1640_v38 = vmul.f32 1.442695, %v1617_v50  ;;  %v1650_v27 = vmul.f32 1.442695, %v1622_v55  ;;  %v1752_v50 = vadd.f32 1.0, %v1751_v15 }
 0x41c   :  { %2325 = vlog2.f32 %v1685_v0  ;;  %v1575_v0 = vpop.f32.mrf.mxu0  ;;  %v3109_v1 = vmul.f32 %v3037_v24, %v1689_v59  ;;  %vm3119_vm4 = vcmp.lt.f32.partialorder %v1682_v57, 0.0004427343  ;;  %v1660_v61 = vmul.f32 0.6931472, %v2316_v6 }
 0x41d   :  { %2327 = vlog2.f32 %v1730_v18  ;;  %v1608_v18 = vand.u32 2147483647, %v3082_v60  ;;  %vm3130_vm5 = vcmp.lt.f32.partialorder %v1691_v13, 0.0004427343  ;;  %v3141_v6 = vmul.f32 %v3072_v46, %v1752_v50 }
 0x41e   :  { %2329 = vpow2.f32 %v1636_v23  ;;  %v1672_v23 = vmul.f32 %v3013_v36, %v1671_v56  ;;  %v1607_v36 = vand.u32 2147483647, %v3103_v21  ;;  %v1760_v56 = vmul.f32 -0.5, %v3088_v10 }
 0x41f   :  { %2331 = vlog2.f32 %v1739_v40  ;;  %v1624_v39 = vsub.f32 0.0, %v1608_v18  ;;  %v3112_v40 = vadd.f32 %v1575_v0, %v3005_v29  ;;  %v3124_v29 = vmul.f32 %v3041_v58, %v1734_v22 }
 0x420   :  { %2333 = vpow2.f32 %v1640_v38  ;;  %v1623_v57 = vsub.f32 0.0, %v1607_v36  ;;  %v1743_v58 = vadd.f32 1.0, %v1742_v48  ;;  %v1745_v18 = vand.u32 2147483647, %v3057_v19 }
 0x421   :  { %2335 = vpow2.f32 %v1650_v27  ;;  %v1654_v54 = vmul.f32 1.442695, %v1624_v39  ;;  %v1609_v59 = vand.u32 2147483647, %v3112_v40  ;;  %v1763_v13 = vand.u32 2147483647, %v3088_v10 }
 0x422   :  { %2337 = vlog2.f32 %v1748_v31  ;;  %v1761_v36 = vadd.f32 1.0, %v1760_v56  ;;  %v1666_v48 = vsel %vm3093_vm2, %v3077_v51, %v1660_v61  ;;  %v3153_v35 = vmul.f32 %v3057_v19, %v1743_v58 }
 0x423   :  { %v1625_v22 = vsub.f32 0.0, %v1609_v59  ;;  %vm3155_vm7 = vcmp.lt.f32.partialorder %v1745_v18, 0.0004427343  ;;  %v1806_v51 = vmax.f32 %v2992_v16, 0.0  ;;  %v1822_v44 = vmul.f32 %v1582_v4, %v2992_v16 }
 0x424   :  { %v1850_v19 = vadd.f32 %v3008_v32, %v1666_v48  ;;  %v1824_v4 = vmul.f32 %v1584_v7, %v3029_v49  ;;  %v1807_v16 = vmax.f32 %v3035_v53, 0.0  ;;  %vm3202_vm8 = vcmp.lt.f32.partialorder %v1754_v43, 0.0004427343 }
 0x425   :  { %v3105_v33 = vpop.eup %2317  ;;  %v1656_v34 = vmul.f32 1.442695, %v1625_v22  ;;  %v1823_v22 = vmul.f32 %v1583_v14, %v3035_v53  ;;  %vm3228_vm10 = vcmp.lt.f32.partialorder %v1763_v13, 0.0004427343 }
 0x426   :  { %v2320_v42 = vpop.eup %2319  ;;  %v1694_v63 = vadd.f32 1.0, %v3105_v33 }
 0x427   :  { %v2322_v24 = vpop.eup %2321  ;;  %v1669_v31 = vmul.f32 0.6931472, %v2320_v42  ;;  %v1652_v42 = vmul.f32 1.442695, %v1623_v57 }
 0x428   :  { %2339 = vlog2.f32 %v1694_v63  ;;  %v3128_v38 = vpop.eup %2323  ;;  %v1678_v26 = vmul.f32 0.6931472, %v2322_v24  ;;  %v1697_v24 = vmul.f32 -0.5, %v3105_v33 }
 0x429   :  { %2341 = vpow2.f32 %v1654_v54  ;;  %v2326_v0 = vpop.eup %2325  ;;  %v1712_v39 = vadd.f32 1.0, %v3128_v38  ;;  %v1675_v59 = vsel %vm3097_vm3, %v1672_v23, %v1669_v31  ;;  %v3169_v31 = vmul.f32 %v3088_v10, %v1761_v36 }
 0x42a   :  { %v2328_v63 = vpop.eup %2327  ;;  %2343 = vlog2.f32 %v1757_v52  ;;  %v1687_v52 = vmul.f32 0.6931472, %v2326_v0  ;;  %v1851_v61 = vadd.f32 %v3019_v41, %v1675_v59  ;;  %v1684_v58 = vsel %vm3119_vm4, %v3085_v3, %v1678_v26 }
 0x42b   :  { %v3144_v54 = vpop.eup %2329  ;;  %2345 = vlog2.f32 %v1712_v39  ;;  %v1732_v2 = vmul.f32 0.6931472, %v2328_v63  ;;  %v1698_v18 = vadd.f32 1.0, %v1697_v24  ;;  %v1700_v39 = vand.u32 2147483647, %v3105_v33 }
 0x42c   :  { %2347 = vpow2.f32 %v1652_v42  ;;  %v1703_v50 = vadd.f32 1.0, %v3144_v54  ;;  %v2332_v56 = vpop.eup %2331  ;;  %v1693_v41 = vsel %vm3130_vm5, %v3109_v1, %v1687_v52  ;;  %v1866_v63 = vadd.f32 %v1851_v61, %v1850_v19 }
 0x42d   :  { %2349 = vpow2.f32 %v1656_v34  ;;  %v3164_v23 = vpop.eup %2333  ;;  %v1808_v34 = vmax.f32 %v3029_v49, 0.0  ;;  %v1738_v7 = vsel %vm3134_vm6, %v3124_v29, %v1732_v2  ;;  %v1741_v49 = vmul.f32 0.6931472, %v2332_v56 }
 0x42e   :  { %2351 = vlog2.f32 %v1703_v50  ;;  %v3172_v0 = vpop.eup %2335  ;;  %v1721_v32 = vadd.f32 1.0, %v3164_v23  ;;  %v1838_v42 = vsub.f32 %v1806_v51, %v1822_v44  ;;  %v1715_v1 = vmul.f32 -0.5, %v3128_v38 }
 0x42f   :  { %v1766_v55 = vadd.f32 1.0, %v3172_v0  ;;  %v2338_v3 = vpop.eup %2337  ;;  %v1852_v8 = vadd.f32 %v3015_v37, %v1684_v58  ;;  %v1853_v14 = vadd.f32 %v3025_v45, %v1693_v41  ;;  %v1840_v53 = vsub.f32 %v1808_v34, %v1824_v4 }
 0x430   :  { %2353 = vlog2.f32 %v1721_v32  ;;  %v1706_v26 = vmul.f32 -0.5, %v3144_v54  ;;  %v1858_v29 = vadd.f32 %v3047_v62, %v1738_v7  ;;  %v1699_v59 = vmul.f32 %v3105_v33, %v1698_v18 }
 0x431   :  { %2355 = vlog2.f32 %v1766_v55  ;;  %v1839_v50 = vsub.f32 %v1807_v16, %v1823_v22  ;;  %v1750_v37 = vmul.f32 0.6931472, %v2338_v3  ;;  %v1747_v45 = vsel %vm3155_vm7, %v3153_v35, %v1741_v49 }
 0x432   :  { %vm1701_vm9 = vcmp.lt.f32.partialorder %v1700_v39, 0.0004427343  ;;  %v1716_v56 = vadd.f32 1.0, %v1715_v1  ;;  %v1718_v46 = vand.u32 2147483647, %v3128_v38  ;;  %v1867_v43 = vadd.f32 %v1866_v63, %v1852_v8 }
 0x433   :  { %v1809_v51 = vmax.f32 %v3062_v25, 0.0  ;;  %v1707_v44 = vadd.f32 1.0, %v1706_v26  ;;  %v1724_v33 = vmul.f32 -0.5, %v3164_v23  ;;  %v1825_v35 = vmul.f32 %v1585_v30, %v3062_v25 }
 0x434   :  { %v1814_v61 = vmax.f32 %v3066_v28, 0.0  ;;  %v1709_v34 = vand.u32 2147483647, %v3144_v54  ;;  %v1859_v4 = vadd.f32 %v3055_v47, %v1747_v45  ;;  %v1769_v16 = vmul.f32 -0.5, %v3172_v0 }
 0x435   :  { %v2340_v27 = vpop.eup %2339  ;;  %v1717_v11 = vmul.f32 %v3128_v38, %v1716_v56  ;;  %vm3233_vm11 = vcmp.lt.f32.partialorder %v1718_v46, 0.0004427343  ;;  %v1868_v25 = vadd.f32 %v1867_v43, %v1853_v14  ;;  %v1708_v3 = vmul.f32 %v3144_v54, %v1707_v44  ;;  %v1914_v46 = vpop.permute.xlu0 %1913 }
 0x436   :  { %v3197_v36 = vpop.eup %2341  ;;  %v1696_v48 = vmul.f32 0.6931472, %v2340_v27  ;;  %v1725_v7 = vadd.f32 1.0, %v1724_v33  ;;  %vm1710_vm12 = vcmp.lt.f32.partialorder %v1709_v34, 0.0004427343  ;;  %v1756_v38 = vsel %vm3202_vm8, %v3141_v6, %v1750_v37 }
 0x437   :  { %v1784_v52 = vadd.f32 1.0, %v3197_v36  ;;  %v2344_v24 = vpop.eup %2343  ;;  %v1727_v10 = vand.u32 2147483647, %v3164_v23  ;;  %v1770_v49 = vadd.f32 1.0, %v1769_v16  ;;  %v1772_v54 = vand.u32 2147483647, %v3172_v0 }
 0x438   :  { %v1702_v62 = vsel %vm1701_vm9, %v1699_v59, %v1696_v48  ;;  %v2346_v2 = vpop.eup %2345  ;;  %v1759_v1 = vmul.f32 0.6931472, %v2344_v24  ;;  %v1830_v27 = vmul.f32 %v1590_v17, %v3066_v28  ;;  %v1875_v26 = vadd.f32 %v1859_v4, %v1858_v29 }
 0x439   :  { %2357 = vlog2.f32 %v1784_v52  ;;  %v3214_v19 = vpop.eup %2347  ;;  %v1854_v57 = vadd.f32 %v1838_v42, %v1702_v62  ;;  %v1714_v32 = vmul.f32 0.6931472, %v2346_v2  ;;  %v1726_v15 = vmul.f32 %v3164_v23, %v1725_v7 }
 0x43a   :  { %v3221_v58 = vpop.eup %2349  ;;  %v1775_v41 = vadd.f32 1.0, %v3214_v19  ;;  %v1841_v6 = vsub.f32 %v1809_v51, %v1825_v35  ;;  %vm1728_vm13 = vcmp.lt.f32.partialorder %v1727_v10, 0.0004427343  ;;  %v1771_v52 = vmul.f32 %v3172_v0, %v1770_v49  ;;  %v2367_v35 = vld [vmem:[%s3299_s0 + $0x38] sm:$0xff] }
 0x43b   :  { %v2352_v18 = vpop.eup %2351  ;;  %v1793_v47 = vadd.f32 1.0, %v3221_v58  ;;  %v1869_v13 = vadd.f32 %v1868_v25, %v1854_v57  ;;  %v1720_v63 = vsel %vm3233_vm11, %v1717_v11, %v1714_v32  ;;  %v1778_v62 = vmul.f32 -0.5, %v3214_v19 }
 0x43c   :  { %v1705_v55 = vmul.f32 0.6931472, %v2352_v18  ;;  %2359 = vlog2.f32 %v1775_v41  ;;  %v1856_v37 = vadd.f32 %v1840_v53, %v1720_v63  ;;  %v1787_v56 = vmul.f32 -0.5, %v3197_v36 }
 0x43d   :  { %2361 = vlog2.f32 %v1793_v47  ;;  %v2354_v42 = vpop.eup %2353  ;;  %v1860_v17 = vadd.f32 %v3050_v5, %v1756_v38  ;;  %vm3254_vm14 = vcmp.lt.f32.partialorder %v1772_v54, 0.0004427343  ;;  %v1765_v53 = vsel %vm3228_vm10, %v3169_v31, %v1759_v1 }
 0x43e   :  { %v1711_v39 = vsel %vm1710_vm12, %v1708_v3, %v1705_v55  ;;  %v2356_v14 = vpop.eup %2355  ;;  %v1723_v48 = vmul.f32 0.6931472, %v2354_v42  ;;  %v1796_v43 = vmul.f32 -0.5, %v3221_v58  ;;  %v1815_v51 = vmax.f32 %v3103_v21, 0.0 }
 0x43f   :  { %v1855_v8 = vadd.f32 %v1839_v50, %v1711_v39  ;;  %v1768_v59 = vmul.f32 0.6931472, %v2356_v14  ;;  %v1846_v50 = vsub.f32 %v1814_v61, %v1830_v27  ;;  %v3329_v5 = vunpack.c.h.bf16 %v2640_v9  ;;  %v1916_v39 = vpop.permute.xlu1 %1915 }
 0x440   :  { %v1729_v24 = vsel %vm1728_vm13, %v1726_v15, %v1723_v48  ;;  %v1876_v57 = vadd.f32 %v1875_v26, %v1860_v17  ;;  %v1593_v31 = vunpack.c.h.bf16 %v2367_v35  ;;  %v1779_v34 = vadd.f32 1.0, %v1778_v62 }
 0x441   :  { %v1870_v45 = vadd.f32 %v1869_v13, %v1855_v8  ;;  %v1857_v23 = vadd.f32 %v1841_v6, %v1729_v24  ;;  %v1774_v0 = vsel %vm3254_vm14, %v1771_v52, %v1768_v59  ;;  %v1831_v44 = vmul.f32 %v3329_v5, %v3103_v21 }
 0x442   :  { %v1788_v4 = vadd.f32 1.0, %v1787_v56  ;;  %v1919_v61 = vsel %vm932_vm1, %v1914_v46, 0.0  ;;  %v1861_v16 = vadd.f32 %v3059_v20, %v1765_v53  ;;  %v1862_v32 = vadd.f32 %v1846_v50, %v1774_v0 }
 0x443   :  { %v1871_v29 = vadd.f32 %v1870_v45, %v1856_v37  ;;  %v1781_v41 = vand.u32 2147483647, %v3214_v19  ;;  %v1790_v9 = vand.u32 2147483647, %v3197_v36  ;;  %v1816_v21 = vmax.f32 %v3082_v60, 0.0 }
 0x444   :  { %v3330_v18 = vunpack.c.l.bf16 %v2652_v12  ;;  %v1797_v30 = vadd.f32 1.0, %v1796_v43  ;;  %v1847_v47 = vsub.f32 %v1815_v51, %v1831_v44  ;;  %v1817_v55 = vmax.f32 %v3112_v40, 0.0 }
 0x445   :  { %v1872_v33 = vadd.f32 %v1871_v29, %v1857_v23  ;;  %v1799_v20 = vand.u32 2147483647, %v3221_v58  ;;  %v1877_v3 = vadd.f32 %v1876_v57, %v1861_v16  ;;  %v1833_v10 = vmul.f32 %v1593_v31, %v3112_v40 }
 0x446   :  { %v2358_v2 = vpop.eup %2357  ;;  %v1832_v22 = vmul.f32 %v3330_v18, %v3082_v60  ;;  %v1780_v38 = vmul.f32 %v3214_v19, %v1779_v34  ;;  %v1789_v49 = vmul.f32 %v3197_v36, %v1788_v4  ;;  %vm1782_vm15 = vcmp.lt.f32.partialorder %v1781_v41, 0.0004427343 }
 0x447   :  { %1873 = vadd.xlane.f32.xlu0 %v1872_v33  ;;  %v1786_v11 = vmul.f32 0.6931472, %v2358_v2  ;;  %vm1791_vm0 = vcmp.lt.f32.partialorder %v1790_v9, 0.0004427343  ;;  %v1878_v60 = vadd.f32 %v1877_v3, %v1862_v32  ;;  %v1798_v1 = vmul.f32 %v3221_v58, %v1797_v30 }
 0x448   :  { %v1848_v54 = vsub.f32 %v1816_v21, %v1832_v22  ;;  %vm1800_vm2 = vcmp.lt.f32.partialorder %v1799_v20, 0.0004427343  ;;  %v1922_v40 = vsel %vm932_vm1, %v1916_v39, 0.0  ;;  %v1849_v14 = vsub.f32 %v1817_v55, %v1833_v10 }
 0x449   :  { %v2360_v25 = vpop.eup %2359  ;;  %v1792_v42 = vsel %vm1791_vm0, %v1789_v49, %v1786_v11  ;;  %vm1884_vm3 = vcmask 7168   ;;  %vm1925_vm4 = vcmask 15368  }
 0x44a   :  { %v2362_v7 = vpop.eup %2361  ;;  %v1777_v13 = vmul.f32 0.6931472, %v2360_v25  ;;  %v1864_v19 = vadd.f32 %v1848_v54, %v1792_v42 }
 0x44b   :  { %v1795_v12 = vmul.f32 0.6931472, %v2362_v7  ;;  %1920 = vadd.xlane.f32.xlu0 %v1919_v61 }
 0x44c   :  { %v1783_v63 = vsel %vm1782_vm15, %v1780_v38, %v1777_v13 }
 0x44d   :  { %v1863_v27 = vadd.f32 %v1847_v47, %v1783_v63  ;;  %v1801_v8 = vsel %vm1800_vm2, %v1798_v1, %v1795_v12 }
 0x44e   :  { %v1865_v36 = vadd.f32 %v1849_v14, %v1801_v8 }
 0x44f   :  { %v1879_v26 = vadd.f32 %v1878_v60, %v1863_v27  ;;  %1923 = vadd.xlane.f32.xlu0 %v1922_v40 }
 0x451   :  { %v1880_v48 = vadd.f32 %v1879_v26, %v1864_v19 }
 0x453   :  { %v1881_v15 = vadd.f32 %v1880_v48, %v1865_v36 }
 0x455   :  { %1882 = vadd.xlane.f32.xlu1 %v1881_v15 }
 0x4d0   :  { %v1874_v6 = vpop.xlane.xlu0 %1873 }
 0x4d1   :  { %1885 = vst.msk [vmem:[%s3308_s10] sm:$0xff] %vm1884_vm3, %v1874_v6 }
 0x4d4   :  { %v1921_v58 = vpop.xlane.xlu0 %1920 }
 0x4d5   :  { %1926 = vst.msk [vmem:[%s3308_s10] sm:$0xff] %vm1925_vm4, %v1921_v58 }
 0x4d8   :  { %v1924_v59 = vpop.xlane.xlu0 %1923 }
 0x4de   :  { %v1883_v37 = vpop.xlane.xlu1 %1882 }
 0x4df   :  { %1886 = vst.msk [vmem:[%s3308_s10 + $0x8] sm:$0xff] %vm1884_vm3, %v1883_v37 }
 0x4e0   :  { %1927 = vst.msk [vmem:[%s3308_s10 + $0x8] sm:$0xff] %vm1925_vm4, %v1924_v59 }

</bundles_post_ra>
